<compile_context>
chip_gen: v7x
topology: tpu7x:2x2x1
jax: 0.10.0
libtpu: 0.0.40
codegen_flags: <defaults>
</compile_context>

<pallas_src>
import functools

import jax
import jax.numpy as jnp
from jax.experimental import pallas as pl
from jax.experimental.pallas import tpu as pltpu

_LANE = 128


def _round_up(n, m):
    return ((n + m - 1) // m) * m


def _pick_time_tile(t_out, batch):
    """Largest lane-aligned time tile (<= 2048) that keeps >= 2 grid steps."""
    t_aligned = _round_up(max(t_out, 1), _LANE)
    tile = min(t_aligned, 2048)
    # v7x: 2 TensorCores share the parallel grid axes — for single-batch inputs
    # keep at least two time tiles so neither core idles.
    if batch == 1 and t_aligned >= 2 * _LANE:
        half = _round_up((t_aligned + 1) // 2, _LANE)
        tile = min(tile, half)
    return tile


def _conv1d_q_kernel(x_ref, w_ref, b_ref, o_ref, *, t_tile, t_load, k_taps):
    """Fused Conv1d(kernel=K, stride=1, no pad) + bias for one (batch, time-tile).

    x_ref: (1, C_in, L_pad)       bf16  resident per batch (DMA'd once per batch)
    w_ref: (C_out_pad, K * C_in)  bf16  taps flattened into the contraction
    b_ref: (C_out_pad, 1)         f32
    o_ref: (1, C_out_pad, T_tile) out   lane-dense (T_tile % 128 == 0)
    """
    # Aligned dynamic window into the resident row: T_tile valid frames + halo.
    start = pl.multiple_of(pl.program_id(1) * t_tile, _LANE)
    xw = x_ref[0, :, pl.ds(start, t_load)]                    # (C_in, T_load)
    # Gather the K taps in-register (static lane shifts on the XLU); one fat
    # MXU contraction over K*C_in with f32 accumulation and fused bias epilogue.
    xk = jnp.concatenate([xw[:, k:k + t_tile] for k in range(k_taps)], axis=0)
    acc = jnp.dot(w_ref[...], xk, preferred_element_type=jnp.float32)
    o_ref[0] = (acc + b_ref[...]).astype(o_ref.dtype)


def conv1d_q_forward(params, x, *, qa_flag=False,
                     compute_dtype=jnp.bfloat16, out_dtype=jnp.float32):
    """Forward pass of Conv1D_Q. x: (B, C_in, L) or (C_in, L)."""
    if x.ndim == 2:
        return conv1d_q_forward(params, x[None], qa_flag=qa_flag,
                                compute_dtype=compute_dtype, out_dtype=out_dtype)[0]
    if x.ndim != 3:
        raise RuntimeError("Conv1D_Q accepts 2/3D tensor as input")
    # TODO(synk): min_max_quantize (QA_flag=True path) was not provided in the
    # source; only the default QA_flag=False path is implemented.
    del qa_flag

    w = params["weight"]                       # (C_out, C_in, K) — PyTorch Conv1d layout
    b = params["bias"]                         # (C_out,)
    B, C_in, L = x.shape
    C_out, _, K = w.shape
    T_out = L - K + 1

    # --- tiling: lane-dense output, zero-padded channels / tail frames ---------
    C_out_pad = _round_up(C_out, _LANE)
    T_tile = _pick_time_tile(T_out, B)
    nT = pl.cdiv(T_out, T_tile)
    T_out_pad = nT * T_tile
    halo_pad = _round_up(K - 1, _LANE) if K > 1 else 0   # lane-round the halo
    T_load = T_tile + halo_pad
    L_pad = T_out_pad + halo_pad                         # >= L by construction

    # Cast to bf16 BEFORE padding (no f32 intermediate traffic), then zero-pad
    # the time axis so every aligned T_load window is in bounds.  No haloed
    # copy is materialized — the halo lives inside the kernel's pl.ds window.
    # TODO(synk): for very long L where a full (C_in, L_pad) bf16 row would not
    # fit VMEM, fall back to a per-tile haloed BlockSpec.
    x_p = jnp.pad(x.astype(compute_dtype), ((0, 0), (0, 0), (0, L_pad - L)))

    # Weight: (C_out, C_in, K) -> (C_out_pad, K*C_in) so that w_flat[:, k*C_in + c]
    # multiplies x[c, t + k]; the K taps become a single fat contraction.
    w_flat = jnp.transpose(w, (0, 2, 1)).reshape(C_out, K * C_in)
    w_flat = jnp.pad(w_flat, ((0, C_out_pad - C_out), (0, 0))).astype(compute_dtype)
    b_col = jnp.pad(b.astype(jnp.float32), (0, C_out_pad - C_out)).reshape(C_out_pad, 1)

    in_itemsize = jnp.dtype(compute_dtype).itemsize
    out_itemsize = jnp.dtype(out_dtype).itemsize
    cost = pl.CostEstimate(
        flops=2 * B * T_out_pad * K * C_in * C_out_pad,
        transcendentals=0,
        bytes_accessed=(B * C_in * L_pad * in_itemsize            # x read once
                        + w_flat.size * in_itemsize
                        + b_col.size * 4
                        + B * C_out_pad * T_out_pad * out_itemsize),
    )

    kernel = functools.partial(_conv1d_q_kernel,
                               t_tile=T_tile, t_load=T_load, k_taps=K)

    out = pl.pallas_call(
        kernel,
        out_shape=jax.ShapeDtypeStruct((B, C_out_pad, T_out_pad), out_dtype),
        grid_spec=pltpu.PrefetchScalarGridSpec(
            num_scalar_prefetch=0,
            grid=(B, nT),
            in_specs=[
                # Resident per-batch input row: index_map constant over the inner
                # time axis -> DMA'd once per batch; halo handled in-kernel.
                pl.BlockSpec((1, C_in, L_pad), lambda bb, tt: (bb, 0, 0)),
                pl.BlockSpec((C_out_pad, K * C_in), lambda bb, tt: (0, 0)),
                pl.BlockSpec((C_out_pad, 1), lambda bb, tt: (0, 0)),
            ],
            out_specs=pl.BlockSpec((1, C_out_pad, T_tile), lambda bb, tt: (bb, 0, tt)),
        ),
        compiler_params=pltpu.CompilerParams(
            dimension_semantics=("parallel", "parallel"),
            vmem_limit_bytes=32 * 1024 * 1024,   # conservative for v7x's 64 MiB/TC
        ),
        cost_estimate=cost,
    )(x_p, w_flat, b_col)

    # Strip channel / time padding (no-op when C_out, T_out are already 128-aligned;
    # for unaligned shapes prefer consuming the padded array downstream).
    return out[:, :C_out, :T_out]


def make_conv1d_q_params(key, input_channel, hidden_channel, kernel):
    """nn.Conv1d-style init (uniform +-1/sqrt(fan_in)), deterministic."""
    kw, kb = jax.random.split(key)
    bound = 1.0 / float((input_channel * kernel) ** 0.5)
    return {
        "weight": jax.random.uniform(kw, (hidden_channel, input_channel, kernel),
                                     jnp.float32, -bound, bound),
        "bias": jax.random.uniform(kb, (hidden_channel,), jnp.float32, -bound, bound),
    }


if __name__ == "__main__":
    # Conv1D_Q(input_channel=16, hidden_channel=128, kernel=3) over a
    # (B=2, 16, L=4098) signal: T_out=4096 -> two 2048-frame time tiles, which
    # exercises the in-kernel dynamic halo window at a non-zero aligned start.
    B, C_in, C_out, K_size, L = 2, 16, 128, 3, 4098
    T_out = L - K_size + 1

    key = jax.random.PRNGKey(0)
    kp, kx = jax.random.split(key)
    params = make_conv1d_q_params(kp, C_in, C_out, K_size)
    x = jax.random.normal(kx, (B, C_in, L), jnp.float32)

    fwd = jax.jit(conv1d_q_forward)
    out = jax.block_until_ready(fwd(params, x))
    assert out.shape == (B, C_out, T_out), out.shape
    assert out.dtype == jnp.float32, out.dtype

    # 2D input path (the module accepts 2D or 3D tensors); B==1 keeps >= 2 grid steps.
    out2d = jax.block_until_ready(fwd(params, x[0]))
    assert out2d.shape == (C_out, T_out), out2d.shape

    # Numerical sanity check vs XLA conv (loose tolerance: bf16 matmul operands).
    ref = jax.lax.conv_general_dilated(
        x, params["weight"], window_strides=(1,), padding="VALID",
        dimension_numbers=("NCH", "OIH", "NCH")) + params["bias"][None, :, None]
    err = float(jnp.max(jnp.abs(out - ref)))
    assert err < 1e-1, f"max abs err {err}"
    err2d = float(jnp.max(jnp.abs(out2d - ref[0])))
    assert err2d < 1e-1, f"2D path max abs err {err2d}"

    # Optional low-traffic variant: bf16 output store (halves dominant HBM write).
    fwd_bf16 = jax.jit(functools.partial(conv1d_q_forward, out_dtype=jnp.bfloat16))
    out_bf16 = jax.block_until_ready(fwd_bf16(params, x))
    assert out_bf16.dtype == jnp.bfloat16
    err_bf16 = float(jnp.max(jnp.abs(out_bf16.astype(jnp.float32) - ref)))
    assert err_bf16 < 2e-1, f"bf16-out max abs err {err_bf16}"

    print("KERNEL_OK")
</pallas_src>

<mosaic_0001>
module attributes {stable_mosaic.version = 11 : i64} {
  func.func @_conv1d_q_kernel(%arg0: i32, %arg1: i32, %arg2: memref<1x16x4224xbf16, #tpu.memory_space<vmem>>, %arg3: memref<128x48xbf16, #tpu.memory_space<vmem>>, %arg4: memref<128x1xf32, #tpu.memory_space<vmem>>, %arg5: memref<1x128x2048xf32, #tpu.memory_space<vmem>>) attributes {dimension_semantics = [#tpu.dimension_semantics<parallel>, #tpu.dimension_semantics<parallel>], iteration_bounds = array<i64: 2, 2>, scalar_prefetch = 0 : i64, scratch_operands = 0 : i64, tpu.core_type = #tpu.core_type<tc>, window_params = [{transform_indices = @transform_0, window_bounds = array<i64: 1, 16, 4224>}, {pipeline_mode = #tpu.pipeline_mode<synchronous>, transform_indices = @transform_1, window_bounds = array<i64: 128, 48>}, {pipeline_mode = #tpu.pipeline_mode<synchronous>, transform_indices = @transform_2, window_bounds = array<i64: 128, 1>}, {transform_indices = @transform_3, window_bounds = array<i64: 1, 128, 2048>}]} {
    %c2048_i32 = arith.constant 2048 : i32
    %0 = arith.muli %arg1, %c2048_i32 : i32
    %1 = tpu.assume_multiple %0, 128 : i32
    %c0 = arith.constant 0 : index
    %c0_0 = arith.constant 0 : index
    %2 = arith.index_cast %1 : i32 to index
    %3 = vector.load %arg2[%c0, %c0_0, %2] : memref<1x16x4224xbf16, #tpu.memory_space<vmem>>, vector<1x16x2176xbf16>
    %4 = vector.shape_cast %3 : vector<1x16x2176xbf16> to vector<16x2176xbf16>
    %5 = vector.extract_strided_slice %4 {offsets = [0, 0], sizes = [16, 2048], strides = [1, 1]} : vector<16x2176xbf16> to vector<16x2048xbf16>
    %6 = vector.extract_strided_slice %4 {offsets = [0, 1], sizes = [16, 2048], strides = [1, 1]} : vector<16x2176xbf16> to vector<16x2048xbf16>
    %7 = vector.extract_strided_slice %4 {offsets = [0, 2], sizes = [16, 2048], strides = [1, 1]} : vector<16x2176xbf16> to vector<16x2048xbf16>
    %8 = tpu.concatenate %5, %6, %7 in 0 : vector<16x2048xbf16>, vector<16x2048xbf16>, vector<16x2048xbf16> -> vector<48x2048xbf16>
    %c0_1 = arith.constant 0 : index
    %c0_2 = arith.constant 0 : index
    %9 = vector.load %arg3[%c0_1, %c0_2] : memref<128x48xbf16, #tpu.memory_space<vmem>>, vector<128x48xbf16>
    %cst = arith.constant dense<0.000000e+00> : vector<128x2048xf32>
    %10 = tpu.matmul %9, %8, %cst {dimension_numbers = #tpu.dot_dimension_numbers<[1], [0], [0], [1], [0, 0, 1, 1], [], []>} : vector<128x48xbf16>, vector<48x2048xbf16>, vector<128x2048xf32> -> vector<128x2048xf32>
    %c0_3 = arith.constant 0 : index
    %c0_4 = arith.constant 0 : index
    %11 = vector.load %arg4[%c0_3, %c0_4] : memref<128x1xf32, #tpu.memory_space<vmem>>, vector<128x1xf32>
    %12 = vector.broadcast %11 : vector<128x1xf32> to vector<128x2048xf32>
    %13 = arith.addf %10, %12 : vector<128x2048xf32>
    %c0_5 = arith.constant 0 : index
    %c0_6 = arith.constant 0 : index
    %c0_7 = arith.constant 0 : index
    %14 = vector.load %arg5[%c0_5, %c0_6, %c0_7] : memref<1x128x2048xf32, #tpu.memory_space<vmem>>, vector<1x128x2048xf32>
    %15 = vector.shape_cast %14 : vector<1x128x2048xf32> to vector<128x2048xf32>
    %16 = vector.shape_cast %13 : vector<128x2048xf32> to vector<1x128x2048xf32>
    tpu.vector_store %arg5[%c0_5, %c0_6, %c0_7], %16 {strides = array<i32>} : memref<1x128x2048xf32, #tpu.memory_space<vmem>>, vector<1x128x2048xf32>,
    return
  }
  func.func @transform_0(%arg0: i32, %arg1: i32) -> (i32, i32, i32) {
    %c0_i32 = arith.constant 0 : i32
    %c0_i32_0 = arith.constant 0 : i32
    %c0_i32_1 = arith.constant 0 : i32
    return %arg0, %c0_i32, %c0_i32_0 : i32, i32, i32
  }
  func.func @transform_1(%arg0: i32, %arg1: i32) -> (i32, i32) {
    %c0_i32 = arith.constant 0 : i32
    %c0_i32_0 = arith.constant 0 : i32
    %c0_i32_1 = arith.constant 0 : i32
    return %c0_i32, %c0_i32_0 : i32, i32
  }
  func.func @transform_2(%arg0: i32, %arg1: i32) -> (i32, i32) {
    %c0_i32 = arith.constant 0 : i32
    %c0_i32_0 = arith.constant 0 : i32
    %c0_i32_1 = arith.constant 0 : i32
    return %c0_i32, %c0_i32_0 : i32, i32
  }
  func.func @transform_3(%arg0: i32, %arg1: i32) -> (i32, i32, i32) {
    %c0_i32 = arith.constant 0 : i32
    %c0_i32_0 = arith.constant 0 : i32
    return %arg0, %c0_i32, %arg1 : i32, i32, i32
  }
}

</mosaic_0001>

<bundles_post_ra>
// kernel: conv1d_q_forward.1
= control target key start
LH: loop header
LB: loop body
LE: loop exit
PB: predicated region body
PF: predicated region fallthrough
CT: control target
= control target key end

     0   :  { %8 = vsyncpa [#allocation3], 0  ;;  %s3341_s0 = inlined_call_operand.vmem [shape: bf16[2,16,4224], index: 0, kind: input, shape index: {}]   ;;  %s3342_s1 = inlined_call_operand.vmem [shape: bf16[128,48], index: 1, kind: input, shape index: {}]   ;;  %s3343_s2 = inlined_call_operand.vmem [shape: f32[128,1], index: 2, kind: input, shape index: {}]   ;;  %s3344_s3 = inlined_call_operand.hbm [shape: f32[2,128,4096], index: 3, kind: output, shape index: {}]  }
   0x1   :  { %10 = vsyncpa [#allocation3 + $0x1], 0  ;;  %s2198_s12 = smov 0   ;;  %s2200_s13 = smov 0  }
   0x2   :  { %s2202_s14 = smov 0   ;;  %s2204_s15 = smov 0  }
   0x3   :  { %s2206_s16 = smov 0   ;;  %s2208_s17 = smov 0  }
   0x4   :  { %s2210_s18 = smov 0   ;;  %s2212_s19 = smov 0  }
   0x5 LB: > { %s1858_s20 = sadd.s32 4294967295, %s2169_s19   ;;  %s1859_s21 = sadd.s32 4294967294, %s2169_s19   ;;  %s2169_s19 = sphi %s2212_s19, %s16_s19   ;;  %s2165_s18 = sphi %s2210_s18, %s3353_s18   ;;  %s2161_s17 = sphi %s2208_s17, %s3352_s17   ;;  %s2157_s16 = sphi %s2206_s16, %s3351_s16   ;;  %s2153_s15 = sphi %s2204_s15, %s3350_s15   ;;  %s2149_s14 = sphi %s2202_s14, %s3349_s14   ;;  %s2145_s13 = sphi %s2200_s13, %s3348_s13   ;;  %s2141_s12 = sphi %s2198_s12, %s3347_s12  }
   0x6   : > { %s25_s22 = sadd.s32 1, %s2161_s17  ;;  %s28_s23 = sadd.s32 1, %s2165_s18 }
   0x7   : > { %p26_p0 = scmp.ge.s32.totalorder %s25_s22, 2  ;;  %p115_p1 = scmp.ne.s32.totalorder %s2149_s14, %s2145_s13 }
   0x8   : > { %p116_p2 = scmp.eq.s32.totalorder %s1858_s20, 3  ;;  %p121_p5 = scmp.ne.s32.totalorder %s2145_s13, %s2141_s12 }
   0x9   : > { %s3355_s22 = smov (%p26_p0, %s25_s22), 0  ;;  %s3357_s23 = smov (!%p26_p0, %s28_s23), %s2165_s18 }
   0xa   : > { %s101_s24 = ssub.s32 %s2161_s17, %s3355_s22  ;;  %p2249_p3 = por %p116_p2, %p115_p1 }
   0xb   : > { %p30_p4 = scmp.ge.s32.totalorder %s3357_s23, 2  ;;  %p122_p6 = scmp.eq.s32.totalorder %s1859_s21, 3 }
   0xc   : > { %p1862_p7 = scmp.ge.s32.totalorder %s2169_s19, 1  ;;  %p154_p9 = scmp.lt.s32.totalorder %s2169_s19, 5 }
   0xd   : > { %s3359_s23 = smov (%p30_p4, %s3357_s23), 0  ;;  %p2258_p8 = por %p122_p6, %p121_p5 }
   0xe   : > { %s100_s27 = ssub.s32 %s2165_s18, %s3359_s23  ;;  %s105_s28 = sadd.s32 1, %s2149_s14 }
   0xf   : > { %s102_s29 = sor.u32 %s101_s24, %s100_s27  ;;  %p155_p10 = pnand %p1862_p7, %p154_p9 }
  0x10   : > { %p103_p11 = scmp.eq.s32.totalorder %s102_s29, 0  ;;  %p178_p12 = scmp.lt.s32.totalorder (!%p155_p10), %s2157_s16, 1  ;;  %v2172_v5 = vmov (!%p155_p10), 0   ;;  %v444_v18 = vld [vmem:[%s3343_s2 + $0x8] sm:$0xff] (!%p155_p10)  ;;  %v443_v19 = vld [vmem:[%s3343_s2] sm:$0xff] (!%p155_p10)  ;;  %v445_v20 = vld [vmem:[%s3343_s2 + $0x10] sm:$0xff] (!%p155_p10) }
  0x11   : > { %158 = sbr.rel (%p155_p10) target bundleno = 649 (0x289), region = 32  ;;  %s1865_s4 = sshll.u32 (!%p155_p10), %s2153_s15, 11  ;;  %636 = vmatprep.mubr.bf16.mxu0 (!%p155_p10), %v2172_v5  ;;  %749 = vmatprep.mubr.bf16.mxu1 (!%p155_p10), %v2172_v5  ;;  %v446_v21 = vld [vmem:[%s3343_s2 + $0x18] sm:$0xff] (!%p155_p10)  ;;  %v447_v22 = vld [vmem:[%s3343_s2 + $0x20] sm:$0xff] (!%p155_p10)  ;;  %v448_v23 = vld [vmem:[%s3343_s2 + $0x28] sm:$0xff] (!%p155_p10)  ;;  %vm327_vm0 = vcmask (!%p155_p10), 1039360  }
  0x12   : > { %s2267_s30 = scalar_select %p103_p11, %s2149_s14, %s105_s28  }
  0x13   : > { %s186_s5 = sshra.s32 (!%p155_p10), %s1865_s4, 7  ;;  %s2171_s21 = smov (!%p155_p10), 127   ;;  %2040 = vset.pattern.permute.xlu0 (!%p155_p10), %v2172_v5  ;;  %2041 = vset.pattern.permute.xlu1 (!%p155_p10), %v2172_v5  ;;  %v449_v24 = vld [vmem:[%s3343_s2 + $0x30] sm:$0xff] (!%p155_p10)  ;;  %v450_v25 = vld [vmem:[%s3343_s2 + $0x38] sm:$0xff] (!%p155_p10)  ;;  %v451_v33 = vld [vmem:[%s3343_s2 + $0x40] sm:$0xff] (!%p155_p10)  ;;  %vm394_vm1 = vcmask (!%p155_p10), 1031168  }
  0x14   : > { %s1866_s8 = sshll.u32 (!%p155_p10), %s186_s5, 2  ;;  %s2173_s24 = smov (!%p155_p10), 126   ;;  %v452_v34 = vld [vmem:[%s3343_s2 + $0x48] sm:$0xff] (!%p155_p10)  ;;  %v453_v41 = vld [vmem:[%s3343_s2 + $0x50] sm:$0xff] (!%p155_p10)  ;;  %v454_v42 = vld [vmem:[%s3343_s2 + $0x58] sm:$0xff] (!%p155_p10)  ;;  %vm579_vm2 = vcmask (!%p155_p10), 392192  }
  0x15   : > { %v2425_v46 = vld [vmem:[%s3342_s1] sm:$0xff] (!%p155_p10)   ;;  %v2446_v55 = vld [vmem:[%s3342_s1 + $0x8] sm:$0xff] (!%p155_p10)   ;;  %s1957_s10 = sshll.u32 (!%p155_p10), %s2153_s15, 4  ;;  %s2174_s4 = smov (!%p155_p10), [#allocation2]  }
  0x16   : > { %v455_v58 = vld [vmem:[%s3343_s2 + $0x60] sm:$0xff] (!%p155_p10)  ;;  %v456_v59 = vld [vmem:[%s3343_s2 + $0x68] sm:$0xff] (!%p155_p10)  ;;  %s2079_s5 = sshll.u32 (!%p155_p10), %s2174_s4, 4  ;;  %s2080_s5 = int_to_ptr.vmem [resolvable:$false] %s2079_s5 }
  0x18   : > { %s179_s6 = scalar_select %p178_p12, %s2157_s16, 1 }
  0x1a   : > { %s1962_s7 = smul.u32 264, %s179_s6  ;;  %s2081_s6 = scalar_lea.vmem %s2080_s5, 65536 }
  0x1c   : > { %s182_s11 = scalar_lea.vmem %s3341_s0, %s1962_s7  ;;  %s175_s7 = sand.u32 1, %s2145_s13  }
  0x1d   : > { %s2275_s20 = scalar_lea.vmem %s182_s11, %s1866_s8  ;;  %s1863_s8 = sshll.u32 %s175_s7, 11 }
  0x1e   : > { %v2042_v0 = vld [vmem:[%s2275_s20 + $0xc] ss:$132 sps:$4 sm:$0xff]   ;;  %v2044_v1 = vld [vmem:[%s2275_s20 + $0x4] ss:$132 sps:$4 sm:$0xff]   ;;  %v2299_v6 = vld [vmem:[%s2275_s20 + $0x18] ss:$132 sps:$4 sm:$0xff]  }
  0x1f   : > { %299 = vrot.lane.b32.xlu1 %v2042_v0, %s2171_s21  ;;  %v2281_v2 = vld [vmem:[%s2275_s20 + $0x10] ss:$132 sps:$4 sm:$0xff]   ;;  %717 = vmatprep.subr.bf16.mxu1 %v2042_v0  ;;  %v2048_v3 = vld [vmem:[%s2275_s20 + $0x8] ss:$132 sps:$4 sm:$0xff]   ;;  %v2049_v4 = vld [vmem:[%s2275_s20] ss:$132 sps:$4 sm:$0xff]  }
  0x20   : > { %295 = vrot.lane.b32.xlu0 %v2044_v1, %s2171_s21  ;;  %604 = vmatprep.subr.bf16.mxu0 %v2044_v1  ;;  %v2304_v7 = vld [vmem:[%s2275_s20 + $0x14] ss:$132 sps:$4 sm:$0xff]   ;;  %v2309_v8 = vld [vmem:[%s2275_s20 + $0x20] ss:$132 sps:$4 sm:$0xff]   ;;  %v2327_v10 = vld [vmem:[%s2275_s20 + $0x28] ss:$132 sps:$4 sm:$0xff]  }
  0x21   : > { %718 = vmatpush1.bf16.msra.mxu1 %v2048_v3  ;;  %605 = vmatpush1.bf16.msra.mxu0 %v2049_v4  ;;  %v2314_v9 = vld [vmem:[%s2275_s20 + $0x1c] ss:$132 sps:$4 sm:$0xff]   ;;  %v2332_v11 = vld [vmem:[%s2275_s20 + $0x24] ss:$132 sps:$4 sm:$0xff]   ;;  %v2337_v12 = vld [vmem:[%s2275_s20 + $0x30] ss:$132 sps:$4 sm:$0xff]  }
  0x22   : > { %v2342_v13 = vld [vmem:[%s2275_s20 + $0x2c] ss:$132 sps:$4 sm:$0xff]   ;;  %v2355_v14 = vld [vmem:[%s2275_s20 + $0x38] ss:$132 sps:$4 sm:$0xff]   ;;  %v2068_v16 = vld [vmem:[%s2275_s20 + $0x40] ss:$132 sps:$4 sm:$0xff]  }
  0x23   : > { %301 = vrot.lane.b32.xlu1 %v2281_v2, %s2171_s21  ;;  %v2360_v15 = vld [vmem:[%s2275_s20 + $0x34] ss:$132 sps:$4 sm:$0xff]   ;;  %v2368_v17 = vld [vmem:[%s2275_s20 + $0x3c] ss:$132 sps:$4 sm:$0xff]   ;;  %s2710_s9 = scalar_lea.vmem [#allocation2], %s1863_s8  ;;  %s1958_s11 = sshll.u32 %s2157_s16, 9 }
  0x24   : > { %297 = vrot.lane.b32.xlu0 %v2048_v3, %s2171_s21  ;;  %s1777_s20 = sadd.s32 %s1958_s11, %s1957_s10  ;;  %s1780_s16 = sshll.u32 %s2710_s9, 4  ;;  %s3280_s16 = int_to_ptr.vmem [resolvable:$true] %s1780_s16 }
  0x25   : > { %s1959_s15 = sshll.u32 %s1777_s20, 7  ;;  %s3289_s28 = scalar_lea.sflag [#allocation3], %s175_s7 }
  0x26   : > { %s3275_s27 = scalar_lea.hbm %s3344_s3, %s1959_s15  ;;  %s2075_s29 = scalar_lea.vmem %s3280_s16, 32768 }
  0x27   : > { %362 = vrot.lane.b32.xlu1 %v2044_v1, %s2173_s24  ;;  %v458_v1 = vld [vmem:[%s3343_s2 + $0x78] sm:$0xff]  ;;  %p2076_p13 = scmp.ne.s32.totalorder %s3280_s16, %s2075_s29  ;;  %p2082_p2 = scmp.lt.s32.totalorder %s3280_s16, %s2080_s5 }
  0x28   : > { %293 = vrot.lane.b32.xlu0 %v2049_v4, %s2171_s21  ;;  %p2083_p4 = scmp.lt.s32.totalorder %s2081_s6, %s2075_s29 }
  0x29   : > { %p2077_p0 = pnand %p2076_p13, %p2249_p3 }
  0x2a   : > { %p2084_p5 = por %p2083_p4, %p2082_p2 }
  0x2b   : > { %366 = vrot.lane.b32.xlu1 %v2042_v0, %s2173_s24  ;;  %v457_v0 = vld [vmem:[%s3343_s2 + $0x70] sm:$0xff]  ;;  %p2078_p1 = pneg %p2077_p0 }
  0x2c   : > { %364 = vrot.lane.b32.xlu0 %v2048_v3, %s2173_s24  ;;  %v2476_v3 = vld [vmem:[%s3342_s1 + $0x10] sm:$0xff]  }
  0x2d   : > { %p2085_p6 = pnand %p2084_p5, %p2078_p1 }
  0x2f   : > { %360 = vrot.lane.b32.xlu1 %v2049_v4, %s2173_s24 }
  0x30   : > { %368 = vrot.lane.b32.xlu0 %v2281_v2, %s2173_s24 }
  0x33   : > { %305 = vrot.lane.b32.xlu1 %v2299_v6, %s2171_s21 }
  0x34   : > { %303 = vrot.lane.b32.xlu0 %v2304_v7, %s2171_s21 }
  0x37   : > { %309 = vrot.lane.b32.xlu1 %v2309_v8, %s2171_s21 }
  0x38   : > { %307 = vrot.lane.b32.xlu0 %v2314_v9, %s2171_s21 }
  0x3b   : > { %372 = vrot.lane.b32.xlu1 %v2299_v6, %s2173_s24 }
  0x3c   : > { %370 = vrot.lane.b32.xlu0 %v2304_v7, %s2173_s24 }
  0x3f   : > { %376 = vrot.lane.b32.xlu1 %v2309_v8, %s2173_s24 }
  0x40   : > { %374 = vrot.lane.b32.xlu0 %v2314_v9, %s2173_s24 }
  0x43   : > { %313 = vrot.lane.b32.xlu1 %v2327_v10, %s2171_s21 }
  0x44   : > { %311 = vrot.lane.b32.xlu0 %v2332_v11, %s2171_s21 }
  0x47   : > { %317 = vrot.lane.b32.xlu1 %v2337_v12, %s2171_s21 }
  0x48   : > { %315 = vrot.lane.b32.xlu0 %v2342_v13, %s2171_s21 }
  0x4b   : > { %380 = vrot.lane.b32.xlu1 %v2327_v10, %s2173_s24 }
  0x4c   : > { %378 = vrot.lane.b32.xlu0 %v2332_v11, %s2173_s24 }
  0x4f   : > { %384 = vrot.lane.b32.xlu1 %v2337_v12, %s2173_s24 }
  0x50   : > { %382 = vrot.lane.b32.xlu0 %v2342_v13, %s2173_s24 }
  0x53   : > { %321 = vrot.lane.b32.xlu1 %v2355_v14, %s2171_s21 }
  0x54   : > { %319 = vrot.lane.b32.xlu0 %v2360_v15, %s2171_s21 }
  0x57   : > { %325 = vrot.lane.b32.xlu1 %v2068_v16, %s2171_s21 }
  0x58   : > { %323 = vrot.lane.b32.xlu0 %v2368_v17, %s2171_s21 }
  0x5b   : > { %388 = vrot.lane.b32.xlu1 %v2355_v14, %s2173_s24 }
  0x5c   : > { %386 = vrot.lane.b32.xlu0 %v2360_v15, %s2173_s24 }
  0x5f   : > { %392 = vrot.lane.b32.xlu1 %v2068_v16, %s2173_s24 }
  0x60   : > { %390 = vrot.lane.b32.xlu0 %v2368_v17, %s2173_s24 }
  0x63   : > { %466 = vperm.xlu1 %2041, %v444_v18  }
  0x64   : > { %461 = vperm.xlu0 %2040, %v443_v19  }
  0x67   : > { %471 = vperm.xlu1 %2041, %v445_v20  }
  0x68   : > { %476 = vperm.xlu0 %2040, %v446_v21  }
  0x6b   : > { %481 = vperm.xlu1 %2041, %v447_v22  }
  0x6c   : > { %486 = vperm.xlu0 %2040, %v448_v23  }
  0x6f   : > { %491 = vperm.xlu1 %2041, %v449_v24   ;;  %v2520_v24 = vld [vmem:[%s3342_s1 + $0x28] sm:$0xff]  }
  0x70   : > { %496 = vperm.xlu0 %2040, %v450_v25  }
  0x73   : > { %501 = vperm.xlu1 %2041, %v451_v33  }
  0x74   : > { %506 = vperm.xlu0 %2040, %v452_v34  }
  0x77   : > { %511 = vperm.xlu1 %2041, %v453_v41  }
  0x78   : > { %516 = vperm.xlu0 %2040, %v454_v42  }
  0x7b   : > { %521 = vperm.xlu1 %2041, %v455_v58  }
  0x7c   : > { %526 = vperm.xlu0 %2040, %v456_v59  }
  0x7f   : > { %531 = vperm.xlu1 %2041, %v457_v0  }
  0x80   : > { %536 = vperm.xlu0 %2040, %v458_v1  }
  0x91   : > { %v300_v26 = vpop.permute.xlu1 %299 }
  0x92   : > { %v296_v27 = vpop.permute.xlu0 %295 }
  0x95   : > { %v302_v28 = vpop.permute.xlu1 %301 }
  0x96   : > { %v298_v29 = vpop.permute.xlu0 %297  ;;  %v331_v30 = vsel %vm327_vm0, %v300_v26, %v302_v28 }
  0x97   : > { %v329_v31 = vsel %vm327_vm0, %v296_v27, %v298_v29  ;;  %719 = vmatprep.subr.bf16.mxu1 %v331_v30  ;;  %v330_v32 = vsel %vm327_vm0, %v298_v29, %v300_v26  ;;  %v2539_v30 = vld [vmem:[%s3342_s1 + $0x30] sm:$0xff]  }
  0x98   : > { %606 = vmatprep.subr.bf16.mxu0 %v329_v31  ;;  %720 = vmatpush1.bf16.msra.mxu1 %v330_v32  ;;  %v2550_v31 = vld [vmem:[%s3342_s1 + $0x38] sm:$0xff]  }
  0x99   : > { %v363_v35 = vpop.permute.xlu1 %362 }
  0x9a   : > { %v294_v36 = vpop.permute.xlu0 %293 }
  0x9b   : > { %v328_v37 = vsel %vm327_vm0, %v294_v36, %v296_v27 }
  0x9c   : > { %607 = vmatpush1.bf16.msra.mxu0 %v328_v37 }
  0x9d   : > { %v367_v38 = vpop.permute.xlu1 %366 }
  0x9e   : > { %v365_v39 = vpop.permute.xlu0 %364 }
  0x9f   : > { %v396_v40 = vsel %vm394_vm1, %v363_v35, %v365_v39  ;;  %v397_v48 = vsel %vm394_vm1, %v365_v39, %v367_v38 }
  0xa0   : > { %608 = vmatprep.subr.bf16.mxu0 %v396_v40 }
  0xa1   : > { %v361_v43 = vpop.permute.xlu1 %360 }
  0xa2   : > { %v369_v44 = vpop.permute.xlu0 %368  ;;  %v395_v45 = vsel %vm394_vm1, %v361_v43, %v363_v35 }
  0xa3   : > { %609 = vmatpush1.bf16.msra.mxu0 %v395_v45  ;;  %v398_v47 = vsel %vm394_vm1, %v367_v38, %v369_v44 }
  0xa4   : > { %721 = vmatprep.subr.bf16.mxu1 %v398_v47  ;;  %830 = vmatprep.subr.bf16.mxu0 %v2304_v7 }
  0xa5   : > { %722 = vmatpush1.bf16.msra.mxu1 %v397_v48  ;;  %v306_v49 = vpop.permute.xlu1 %305 }
  0xa6   : > { %v304_v50 = vpop.permute.xlu0 %303  ;;  %1892 = vmatmul.mubr.msk.bf16.vlgmr.msra.gmra.mrb[0].mxu0 %vm579_vm2, %v2425_v46  ;;  %943 = vmatprep.subr.bf16.mxu1 %v2314_v9 }
  0xa7   : > { %831 = vmatpush1.bf16.msra.mxu0 %v2281_v2  ;;  %v333_v51 = vsel %vm327_vm0, %v304_v50, %v306_v49  ;;  %646 = vmatprep.mubr.bf16.mxu0 %v2172_v5  ;;  %v332_v53 = vsel %vm327_vm0, %v302_v28, %v304_v50 }
  0xa8   : > { %1900 = vmatmul.mubr.msk.bf16.vlgmr.msra.gmra.mrb[0].mxu1 %vm579_vm2, %v2425_v46  ;;  %832 = vmatprep.subr.bf16.mxu0 %v333_v51 }
  0xa9   : > { %944 = vmatpush1.bf16.msra.mxu1 %v2299_v6  ;;  %v2439_v52 = vpop.permute.xlu1 %309  ;;  %759 = vmatprep.mubr.bf16.mxu1 %v2172_v5 }
  0xaa   : > { %v308_v54 = vpop.permute.xlu0 %307 }
  0xab   : > { %v334_v56 = vsel %vm327_vm0, %v306_v49, %v308_v54  ;;  %833 = vmatpush1.bf16.msra.mxu0 %v332_v53  ;;  %v335_v57 = vsel %vm327_vm0, %v308_v54, %v2439_v52 }
  0xac   : > { %945 = vmatprep.subr.bf16.mxu1 %v335_v57 }
  0xad   : > { %v373_v60 = vpop.permute.xlu1 %372  ;;  %946 = vmatpush1.bf16.msra.mxu1 %v334_v56 }
  0xae   : > { %v371_v61 = vpop.permute.xlu0 %370  ;;  %1893 = vmatmul.mubr.msk.bf16.gmra.mrb[4].mxu0 %vm579_vm2, %v2446_v55 }
  0xaf   : > { %v399_v62 = vsel %vm394_vm1, %v369_v44, %v371_v61  ;;  %v400_v63 = vsel %vm394_vm1, %v371_v61, %v373_v60  ;;  %656 = vmatprep.mubr.bf16.mxu0 %v2172_v5 }
  0xb0   : > { %1901 = vmatmul.mubr.msk.bf16.gmra.mrb[4].mxu1 %vm579_vm2, %v2446_v55  ;;  %834 = vmatprep.subr.bf16.mxu0 %v400_v63 }
  0xb1   : > { %835 = vmatpush1.bf16.msra.mxu0 %v399_v62  ;;  %769 = vmatprep.mubr.bf16.mxu1 %v2172_v5  ;;  %v2471_v2 = vpop.permute.xlu1 %376 }
  0xb2   : > { %v375_v4 = vpop.permute.xlu0 %374  ;;  %1056 = vmatprep.subr.bf16.mxu0 %v2332_v11  ;;  %v2492_v11 = vld [vmem:[%s3342_s1 + $0x18] sm:$0xff]  }
  0xb3   : > { %v401_v6 = vsel %vm394_vm1, %v373_v60, %v375_v4  ;;  %v402_v7 = vsel %vm394_vm1, %v375_v4, %v2471_v2 }
  0xb4   : > { %947 = vmatprep.subr.bf16.mxu1 %v402_v7 }
  0xb5   : > { %948 = vmatpush1.bf16.msra.mxu1 %v401_v6  ;;  %v314_v19 = vpop.permute.xlu1 %313 }
  0xb6   : > { %1894 = vmatmul.mubr.msk.bf16.gmra.mrb[8].mxu0 %vm579_vm2, %v2476_v3  ;;  %v312_v9 = vpop.permute.xlu0 %311  ;;  %1169 = vmatprep.subr.bf16.mxu1 %v2342_v13  ;;  %v2503_v13 = vld [vmem:[%s3342_s1 + $0x20] sm:$0xff]  }
  0xb7   : > { %666 = vmatprep.mubr.bf16.mxu0 %v2172_v5  ;;  %v337_v32 = vsel %vm327_vm0, %v312_v9, %v314_v19  ;;  %v336_v35 = vsel %vm327_vm0, %v2439_v52, %v312_v9 }
  0xb8   : > { %1902 = vmatmul.mubr.msk.bf16.gmra.mrb[8].mxu1 %vm579_vm2, %v2476_v3 }
  0xb9   : > { %779 = vmatprep.mubr.bf16.mxu1 %v2172_v5  ;;  %v318_v21 = vpop.permute.xlu1 %317 }
  0xba   : > { %v316_v16 = vpop.permute.xlu0 %315 }
  0xbb   : > { %v339_v33 = vsel %vm327_vm0, %v316_v16, %v318_v21  ;;  %v338_v36 = vsel %vm327_vm0, %v314_v19, %v316_v16 }
  0xbd   : > { %v381_v25 = vpop.permute.xlu1 %380 }
  0xbe   : > { %1895 = vmatmul.mubr.msk.bf16.gmra.mrb[12].mxu0 %vm579_vm2, %v2492_v11  ;;  %v379_v18 = vpop.permute.xlu0 %378 }
  0xbf   : > { %676 = vmatprep.mubr.bf16.mxu0 %v2172_v5  ;;  %v404_v34 = vsel %vm394_vm1, %v379_v18, %v381_v25  ;;  %v403_v37 = vsel %vm394_vm1, %v2471_v2, %v379_v18 }
  0xc0   : > { %1903 = vmatmul.mubr.msk.bf16.gmra.mrb[12].mxu1 %vm579_vm2, %v2492_v11 }
  0xc1   : > { %789 = vmatprep.mubr.bf16.mxu1 %v2172_v5  ;;  %v385_v27 = vpop.permute.xlu1 %384 }
  0xc2   : > { %v383_v20 = vpop.permute.xlu0 %382 }
  0xc6   : > { %1896 = vmatmul.mubr.msk.bf16.gmra.mrb[16].mxu0 %vm579_vm2, %v2503_v13  ;;  %v2507_v22 = vpop.permute.xlu0 %319 }
  0xc7   : > { %686 = vmatprep.mubr.bf16.mxu0 %v2172_v5  ;;  %v2512_v23 = vsel %vm327_vm0, %v318_v21, %v2507_v22 }
  0xc8   : > { %1904 = vmatmul.mubr.msk.bf16.gmra.mrb[16].mxu1 %vm579_vm2, %v2503_v13 }
  0xc9   : > { %799 = vmatprep.mubr.bf16.mxu1 %v2172_v5 }
  0xca   : > { %v2522_v26 = vpop.permute.xlu0 %323 }
  0xce   : > { %1897 = vmatmul.mubr.msk.bf16.gmra.mrb[20].mxu0 %vm579_vm2, %v2520_v24  ;;  %v2526_v28 = vpop.permute.xlu0 %386 }
  0xcf   : > { %696 = vmatprep.mubr.bf16.mxu0 %v2172_v5  ;;  %v2531_v29 = vsel %vm394_vm1, %v385_v27, %v2526_v28 }
  0xd0   : > { %1905 = vmatmul.mubr.msk.bf16.gmra.mrb[20].mxu1 %vm579_vm2, %v2520_v24 }
  0xd1   : > { %809 = vmatprep.mubr.bf16.mxu1 %v2172_v5 }
  0xd2   : > { %v391_v42 = vpop.permute.xlu0 %390 }
  0xd6   : > { %1898 = vmatmul.mubr.msk.bf16.gmra.mrb[24].mxu0 %vm579_vm2, %v2539_v30 }
  0xd7   : > { %706 = vmatprep.mubr.bf16.mxu0 %v2172_v5 }
  0xd8   : > { %1906 = vmatmul.mubr.msk.bf16.gmra.mrb[24].mxu1 %vm579_vm2, %v2539_v30 }
  0xd9   : > { %819 = vmatprep.mubr.bf16.mxu1 %v2172_v5 }
  0xde   : > { %1899 = vmatmul.mubr.msk.bf16.gmra.mrb[28].mxu0 %vm579_vm2, %v2550_v31 }
  0xdf   : > { %862 = vmatprep.mubr.bf16.mxu0 %v2172_v5 }
  0xe0   : > { %1907 = vmatmul.mubr.msk.bf16.gmra.mrb[28].mxu1 %vm579_vm2, %v2550_v31 }
  0xe1   : > { %975 = vmatprep.mubr.bf16.mxu1 %v2172_v5 }
  0xe3   : > { %v2699_v45 = vpop.permute.xlu0 %461 }
  0xe6   : > { %1908 = vmatmul.mubr.msk.bf16.vlgmr.msra.gmra.mrb[32].mxu0 %vm579_vm2, %v2425_v46 }
  0xe7   : > { %1057 = vmatpush1.bf16.msra.mxu0 %v2309_v8  ;;  %872 = vmatprep.mubr.bf16.mxu0 %v2172_v5  ;;  %v406_v8 = vsel %vm394_vm1, %v383_v20, %v385_v27  ;;  %v2732_v1 = vpop.permute.xlu0 %476 }
  0xe8   : > { %1916 = vmatmul.mubr.msk.bf16.vlgmr.msra.gmra.mrb[32].mxu1 %vm579_vm2, %v2425_v46  ;;  %1058 = vmatprep.subr.bf16.mxu0 %v337_v32 }
  0xe9   : > { %1170 = vmatpush1.bf16.msra.mxu1 %v2327_v10  ;;  %985 = vmatprep.mubr.bf16.mxu1 %v2172_v5  ;;  %v405_v10 = vsel %vm394_vm1, %v381_v25, %v383_v20 }
  0xea   : > { %1171 = vmatprep.subr.bf16.mxu1 %v339_v33 }
  0xeb   : > { %1059 = vmatpush1.bf16.msra.mxu0 %v336_v35 }
  0xec   : > { %1060 = vmatprep.subr.bf16.mxu0 %v404_v34 }
  0xed   : > { %1172 = vmatpush1.bf16.msra.mxu1 %v338_v36 }
  0xee   : > { %1909 = vmatmul.mubr.msk.bf16.gmra.mrb[36].mxu0 %vm579_vm2, %v2446_v55  ;;  %1173 = vmatprep.subr.bf16.mxu1 %v406_v8 }
  0xef   : > { %1061 = vmatpush1.bf16.msra.mxu0 %v403_v37  ;;  %882 = vmatprep.mubr.bf16.mxu0 %v2172_v5 }
  0xf0   : > { %1917 = vmatmul.mubr.msk.bf16.gmra.mrb[36].mxu1 %vm579_vm2, %v2446_v55  ;;  %1282 = vmatprep.subr.bf16.mxu0 %v2360_v15  ;;  %v322_v15 = vpop.permute.xlu1 %321 }
  0xf1   : > { %995 = vmatprep.mubr.bf16.mxu1 %v2172_v5  ;;  %1174 = vmatpush1.bf16.msra.mxu1 %v405_v10  ;;  %v341_v39 = vsel %vm327_vm0, %v2507_v22, %v322_v15 }
  0xf2   : > { %1395 = vmatprep.subr.bf16.mxu1 %v2368_v17 }
  0xf4   : > { %v326_v17 = vpop.permute.xlu1 %325 }
  0xf5   : > { %v343_v40 = vsel %vm327_vm0, %v2522_v26, %v326_v17 }
  0xf6   : > { %1910 = vmatmul.mubr.msk.bf16.gmra.mrb[40].mxu0 %vm579_vm2, %v2476_v3 }
  0xf7   : > { %892 = vmatprep.mubr.bf16.mxu0 %v2172_v5 }
  0xf8   : > { %1918 = vmatmul.mubr.msk.bf16.gmra.mrb[40].mxu1 %vm579_vm2, %v2476_v3  ;;  %v389_v38 = vpop.permute.xlu1 %388 }
  0xf9   : > { %1005 = vmatprep.mubr.bf16.mxu1 %v2172_v5  ;;  %v408_v43 = vsel %vm394_vm1, %v2526_v28, %v389_v38  ;;  %v2758_v28 = vpop.permute.xlu0 %486 }
  0xfc   : > { %v393_v41 = vpop.permute.xlu1 %392 }
  0xfd   : > { %v410_v44 = vsel %vm394_vm1, %v391_v42, %v393_v41 }
  0xfe   : > { %1911 = vmatmul.mubr.msk.bf16.gmra.mrb[44].mxu0 %vm579_vm2, %v2492_v11 }
  0xff   : > { %902 = vmatprep.mubr.bf16.mxu0 %v2172_v5 }
 0x100   : > { %1919 = vmatmul.mubr.msk.bf16.gmra.mrb[44].mxu1 %vm579_vm2, %v2492_v11  ;;  %v2704_v47 = vpop.permute.xlu1 %466 }
 0x101   : > { %1015 = vmatprep.mubr.bf16.mxu1 %v2172_v5 }
 0x104   : > { %v2725_v63 = vpop.permute.xlu1 %471 }
 0x106   : > { %1912 = vmatmul.mubr.msk.bf16.gmra.mrb[48].mxu0 %vm579_vm2, %v2503_v13 }
 0x107   : > { %912 = vmatprep.mubr.bf16.mxu0 %v2172_v5 }
 0x108   : > { %1920 = vmatmul.mubr.msk.bf16.gmra.mrb[48].mxu1 %vm579_vm2, %v2503_v13 }
 0x109   : > { %1025 = vmatprep.mubr.bf16.mxu1 %v2172_v5 }
 0x10e   : > { %1913 = vmatmul.mubr.msk.bf16.gmra.mrb[52].mxu0 %vm579_vm2, %v2520_v24 }
 0x10f   : > { %922 = vmatprep.mubr.bf16.mxu0 %v2172_v5 }
 0x110   : > { %1921 = vmatmul.mubr.msk.bf16.gmra.mrb[52].mxu1 %vm579_vm2, %v2520_v24 }
 0x111   : > { %1035 = vmatprep.mubr.bf16.mxu1 %v2172_v5 }
 0x116   : > { %1914 = vmatmul.mubr.msk.bf16.gmra.mrb[56].mxu0 %vm579_vm2, %v2539_v30 }
 0x117   : > { %932 = vmatprep.mubr.bf16.mxu0 %v2172_v5 }
 0x118   : > { %1922 = vmatmul.mubr.msk.bf16.gmra.mrb[56].mxu1 %vm579_vm2, %v2539_v30 }
 0x119   : > { %1045 = vmatprep.mubr.bf16.mxu1 %v2172_v5 }
 0x11e   : > { %1915 = vmatmul.mubr.msk.bf16.gmra.mrb[60].mxu0 %vm579_vm2, %v2550_v31 }
 0x11f   : > { %1088 = vmatprep.mubr.bf16.mxu0 %v2172_v5 }
 0x120   : > { %1923 = vmatmul.mubr.msk.bf16.gmra.mrb[60].mxu1 %vm579_vm2, %v2550_v31 }
 0x121   : > { %1201 = vmatprep.mubr.bf16.mxu1 %v2172_v5 }
 0x126   : > { %1924 = vmatmul.mubr.msk.bf16.vlgmr.msra.gmra.mrb[64].mxu0 %vm579_vm2, %v2425_v46 }
 0x127   : > { %1283 = vmatpush1.bf16.msra.mxu0 %v2337_v12  ;;  %1098 = vmatprep.mubr.bf16.mxu0 %v2172_v5  ;;  %v342_v12 = vsel %vm327_vm0, %v322_v15, %v2522_v26  ;;  %v2751_v26 = vpop.permute.xlu1 %481 }
 0x128   : > { %1932 = vmatmul.mubr.msk.bf16.vlgmr.msra.gmra.mrb[64].mxu1 %vm579_vm2, %v2425_v46  ;;  %1284 = vmatprep.subr.bf16.mxu0 %v341_v39 }
 0x129   : > { %1396 = vmatpush1.bf16.msra.mxu1 %v2355_v14  ;;  %1211 = vmatprep.mubr.bf16.mxu1 %v2172_v5  ;;  %v409_v14 = vsel %vm394_vm1, %v389_v38, %v391_v42 }
 0x12a   : > { %1397 = vmatprep.subr.bf16.mxu1 %v343_v40 }
 0x12b   : > { %1285 = vmatpush1.bf16.msra.mxu0 %v2512_v23  ;;  %v2777_v41 = vpop.permute.xlu1 %491 }
 0x12c   : > { %1286 = vmatprep.subr.bf16.mxu0 %v408_v43  ;;  %v2784_v43 = vpop.permute.xlu0 %496 }
 0x12d   : > { %1398 = vmatpush1.bf16.msra.mxu1 %v342_v12 }
 0x12e   : > { %1925 = vmatmul.mubr.msk.bf16.gmra.mrb[68].mxu0 %vm579_vm2, %v2446_v55  ;;  %1399 = vmatprep.subr.bf16.mxu1 %v410_v44 }
 0x12f   : > { %1287 = vmatpush1.bf16.msra.mxu0 %v2531_v29  ;;  %1108 = vmatprep.mubr.bf16.mxu0 %v2172_v5 }
 0x130   : > { %1933 = vmatmul.mubr.msk.bf16.gmra.mrb[68].mxu1 %vm579_vm2, %v2446_v55 }
 0x131   : > { %1221 = vmatprep.mubr.bf16.mxu1 %v2172_v5  ;;  %1400 = vmatpush1.bf16.msra.mxu1 %v409_v14 }
 0x136   : > { %1926 = vmatmul.mubr.msk.bf16.gmra.mrb[72].mxu0 %vm579_vm2, %v2476_v3 }
 0x137   : > { %1118 = vmatprep.mubr.bf16.mxu0 %v2172_v5 }
 0x138   : > { %1934 = vmatmul.mubr.msk.bf16.gmra.mrb[72].mxu1 %vm579_vm2, %v2476_v3 }
 0x139   : > { %1231 = vmatprep.mubr.bf16.mxu1 %v2172_v5 }
 0x13e   : > { %1927 = vmatmul.mubr.msk.bf16.gmra.mrb[76].mxu0 %vm579_vm2, %v2492_v11 }
 0x13f   : > { %1128 = vmatprep.mubr.bf16.mxu0 %v2172_v5 }
 0x140   : > { %1935 = vmatmul.mubr.msk.bf16.gmra.mrb[76].mxu1 %vm579_vm2, %v2492_v11 }
 0x141   : > { %1241 = vmatprep.mubr.bf16.mxu1 %v2172_v5 }
 0x146   : > { %1928 = vmatmul.mubr.msk.bf16.gmra.mrb[80].mxu0 %vm579_vm2, %v2503_v13 }
 0x147   : > { %1138 = vmatprep.mubr.bf16.mxu0 %v2172_v5 }
 0x148   : > { %1936 = vmatmul.mubr.msk.bf16.gmra.mrb[80].mxu1 %vm579_vm2, %v2503_v13 }
 0x149   : > { %1251 = vmatprep.mubr.bf16.mxu1 %v2172_v5 }
 0x14e   : > { %1929 = vmatmul.mubr.msk.bf16.gmra.mrb[84].mxu0 %vm579_vm2, %v2520_v24 }
 0x14f   : > { %1148 = vmatprep.mubr.bf16.mxu0 %v2172_v5 }
 0x150   : > { %1937 = vmatmul.mubr.msk.bf16.gmra.mrb[84].mxu1 %vm579_vm2, %v2520_v24 }
 0x151   : > { %1261 = vmatprep.mubr.bf16.mxu1 %v2172_v5 }
 0x156   : > { %1930 = vmatmul.mubr.msk.bf16.gmra.mrb[88].mxu0 %vm579_vm2, %v2539_v30 }
 0x157   : > { %1158 = vmatprep.mubr.bf16.mxu0 %v2172_v5 }
 0x158   : > { %1938 = vmatmul.mubr.msk.bf16.gmra.mrb[88].mxu1 %vm579_vm2, %v2539_v30 }
 0x159   : > { %1271 = vmatprep.mubr.bf16.mxu1 %v2172_v5 }
 0x15e   : > { %1931 = vmatmul.mubr.msk.bf16.gmra.mrb[92].mxu0 %vm579_vm2, %v2550_v31 }
 0x15f   : > { %1314 = vmatprep.mubr.bf16.mxu0 %v2172_v5 }
 0x160   : > { %1939 = vmatmul.mubr.msk.bf16.gmra.mrb[92].mxu1 %vm579_vm2, %v2550_v31 }
 0x161   : > { %1427 = vmatprep.mubr.bf16.mxu1 %v2172_v5 }
 0x166   : > { %1940 = vmatmul.mubr.msk.bf16.vlgmr.msra.gmra.mrb[96].mxu0 %vm579_vm2, %v2425_v46 }
 0x167   : > { %1324 = vmatprep.mubr.bf16.mxu0 %v2172_v5 }
 0x168   : > { %1948 = vmatmul.mubr.msk.bf16.vlgmr.msra.gmra.mrb[96].mxu1 %vm579_vm2, %v2425_v46 }
 0x169   : > { %1437 = vmatprep.mubr.bf16.mxu1 %v2172_v5 }
 0x16e   : > { %1941 = vmatmul.mubr.msk.bf16.gmra.mrb[100].mxu0 %vm579_vm2, %v2446_v55 }
 0x16f   : > { %1334 = vmatprep.mubr.bf16.mxu0 %v2172_v5 }
 0x170   : > { %1949 = vmatmul.mubr.msk.bf16.gmra.mrb[100].mxu1 %vm579_vm2, %v2446_v55 }
 0x171   : > { %1447 = vmatprep.mubr.bf16.mxu1 %v2172_v5 }
 0x176   : > { %1942 = vmatmul.mubr.msk.bf16.gmra.mrb[104].mxu0 %vm579_vm2, %v2476_v3 }
 0x177   : > { %1344 = vmatprep.mubr.bf16.mxu0 %v2172_v5 }
 0x178   : > { %1950 = vmatmul.mubr.msk.bf16.gmra.mrb[104].mxu1 %vm579_vm2, %v2476_v3 }
 0x179   : > { %v638_v46 = vpop.f32.mrb[0].mxu0  ;;  %1457 = vmatprep.mubr.bf16.mxu1 %v2172_v5 }
 0x17a   : > { %v640_v48 = vpop.f32.mrb[1].mxu0  ;;  %v639_v49 = vadd.f32 %v638_v46, %v2699_v45 }
 0x17b   : > { %v751_v50 = vpop.f32.mrb[0].mxu1  ;;  %v641_v51 = vadd.f32 %v640_v48, %v2699_v45  ;;  %v642_v52 = vpop.f32.mrb[2].mxu0 }
 0x17c   : > { %v753_v53 = vpop.f32.mrb[1].mxu1  ;;  %v752_v54 = vadd.f32 %v751_v50, %v2699_v45  ;;  %1508 = vst [vmem:[%s2710_s9] sm:$0xff] %v639_v49  ;;  %v643_v55 = vadd.f32 %v642_v52, %v2704_v47  ;;  %v644_v56 = vpop.f32.mrb[3].mxu0 }
 0x17d   : > { %v754_v57 = vadd.f32 %v753_v53, %v2699_v45  ;;  %1509 = vst [vmem:[%s2710_s9 + $0x8] sm:$0xff] %v641_v51  ;;  %v645_v58 = vadd.f32 %v644_v56, %v2704_v47  ;;  %v755_v59 = vpop.f32.mrb[2].mxu1 }
 0x17e   : > { %1510 = vst [vmem:[%s2710_s9 + $0x10] sm:$0xff] %v752_v54  ;;  %1524 = vst [vmem:[%s2710_s9 + $0x80] sm:$0xff] %v643_v55  ;;  %v756_v60 = vadd.f32 %v755_v59, %v2704_v47  ;;  %v757_v61 = vpop.f32.mrb[3].mxu1  ;;  %1943 = vmatmul.mubr.msk.bf16.gmra.mrb[108].mxu0 %vm579_vm2, %v2492_v11 }
 0x17f   : > { %1511 = vst [vmem:[%s2710_s9 + $0x18] sm:$0xff] %v754_v57  ;;  %1525 = vst [vmem:[%s2710_s9 + $0x88] sm:$0xff] %v645_v58  ;;  %v758_v62 = vadd.f32 %v757_v61, %v2704_v47  ;;  %1354 = vmatprep.mubr.bf16.mxu0 %v2172_v5  ;;  %v2803_v58 = vpop.permute.xlu1 %501 }
 0x180   : > { %1526 = vst [vmem:[%s2710_s9 + $0x90] sm:$0xff] %v756_v60  ;;  %1951 = vmatmul.mubr.msk.bf16.gmra.mrb[108].mxu1 %vm579_vm2, %v2492_v11  ;;  %v2810_v60 = vpop.permute.xlu0 %506 }
 0x181   : > { %1527 = vst [vmem:[%s2710_s9 + $0x98] sm:$0xff] %v758_v62  ;;  %v648_v0 = vpop.f32.mrb[4].mxu0  ;;  %1467 = vmatprep.mubr.bf16.mxu1 %v2172_v5 }
 0x182   : > { %v650_v2 = vpop.f32.mrb[5].mxu0  ;;  %v649_v3 = vadd.f32 %v648_v0, %v2725_v63 }
 0x183   : > { %v761_v4 = vpop.f32.mrb[4].mxu1  ;;  %v651_v6 = vadd.f32 %v650_v2, %v2725_v63  ;;  %v652_v7 = vpop.f32.mrb[6].mxu0 }
 0x184   : > { %v762_v9 = vadd.f32 %v761_v4, %v2725_v63  ;;  %1540 = vst [vmem:[%s2710_s9 + $0x100] sm:$0xff] %v649_v3  ;;  %v763_v11 = vpop.f32.mrb[5].mxu1  ;;  %v653_v16 = vadd.f32 %v652_v7, %v2732_v1  ;;  %v654_v18 = vpop.f32.mrb[7].mxu0 }
 0x185   : > { %1541 = vst [vmem:[%s2710_s9 + $0x108] sm:$0xff] %v651_v6  ;;  %v764_v19 = vadd.f32 %v763_v11, %v2725_v63  ;;  %v655_v20 = vadd.f32 %v654_v18, %v2732_v1  ;;  %v765_v21 = vpop.f32.mrb[6].mxu1 }
 0x186   : > { %1542 = vst [vmem:[%s2710_s9 + $0x110] sm:$0xff] %v762_v9  ;;  %1556 = vst [vmem:[%s2710_s9 + $0x180] sm:$0xff] %v653_v16  ;;  %v766_v22 = vadd.f32 %v765_v21, %v2732_v1  ;;  %v767_v23 = vpop.f32.mrb[7].mxu1  ;;  %1944 = vmatmul.mubr.msk.bf16.gmra.mrb[112].mxu0 %vm579_vm2, %v2503_v13 }
 0x187   : > { %1543 = vst [vmem:[%s2710_s9 + $0x118] sm:$0xff] %v764_v19  ;;  %1557 = vst [vmem:[%s2710_s9 + $0x188] sm:$0xff] %v655_v20  ;;  %v768_v25 = vadd.f32 %v767_v23, %v2732_v1  ;;  %1364 = vmatprep.mubr.bf16.mxu0 %v2172_v5  ;;  %v2829_v20 = vpop.permute.xlu1 %511 }
 0x188   : > { %1558 = vst [vmem:[%s2710_s9 + $0x190] sm:$0xff] %v766_v22  ;;  %1952 = vmatmul.mubr.msk.bf16.gmra.mrb[112].mxu1 %vm579_vm2, %v2503_v13  ;;  %v2835_v22 = vpop.permute.xlu0 %516 }
 0x189   : > { %1559 = vst [vmem:[%s2710_s9 + $0x198] sm:$0xff] %v768_v25  ;;  %v658_v27 = vpop.f32.mrb[8].mxu0  ;;  %1477 = vmatprep.mubr.bf16.mxu1 %v2172_v5 }
 0x18a   : > { %v660_v29 = vpop.f32.mrb[9].mxu0  ;;  %v659_v32 = vadd.f32 %v658_v27, %v2751_v26 }
 0x18b   : > { %v771_v33 = vpop.f32.mrb[8].mxu1  ;;  %v661_v34 = vadd.f32 %v660_v29, %v2751_v26  ;;  %v662_v35 = vpop.f32.mrb[10].mxu0 }
 0x18c   : > { %v772_v36 = vadd.f32 %v771_v33, %v2751_v26  ;;  %1572 = vst [vmem:[%s2710_s9 + $0x200] sm:$0xff] %v659_v32  ;;  %v773_v13 = vpop.f32.mrb[9].mxu1  ;;  %v663_v8 = vadd.f32 %v662_v35, %v2758_v28  ;;  %v664_v37 = vpop.f32.mrb[11].mxu0 }
 0x18d   : > { %1573 = vst [vmem:[%s2710_s9 + $0x208] sm:$0xff] %v661_v34  ;;  %v774_v10 = vadd.f32 %v773_v13, %v2751_v26  ;;  %v665_v15 = vadd.f32 %v664_v37, %v2758_v28  ;;  %v775_v17 = vpop.f32.mrb[10].mxu1 }
 0x18e   : > { %1574 = vst [vmem:[%s2710_s9 + $0x210] sm:$0xff] %v772_v36  ;;  %1588 = vst [vmem:[%s2710_s9 + $0x280] sm:$0xff] %v663_v8  ;;  %v776_v38 = vadd.f32 %v775_v17, %v2758_v28  ;;  %v777_v39 = vpop.f32.mrb[11].mxu1  ;;  %1945 = vmatmul.mubr.msk.bf16.gmra.mrb[116].mxu0 %vm579_vm2, %v2520_v24  ;;  %v2851_v17 = vpop.permute.xlu1 %521 }
 0x18f   : > { %1575 = vst [vmem:[%s2710_s9 + $0x218] sm:$0xff] %v774_v10  ;;  %1589 = vst [vmem:[%s2710_s9 + $0x288] sm:$0xff] %v665_v15  ;;  %v778_v40 = vadd.f32 %v777_v39, %v2758_v28  ;;  %1374 = vmatprep.mubr.bf16.mxu0 %v2172_v5  ;;  %v2855_v39 = vpop.permute.xlu0 %526 }
 0x190   : > { %1590 = vst [vmem:[%s2710_s9 + $0x290] sm:$0xff] %v776_v38  ;;  %1953 = vmatmul.mubr.msk.bf16.gmra.mrb[116].mxu1 %vm579_vm2, %v2520_v24 }
 0x191   : > { %1591 = vst [vmem:[%s2710_s9 + $0x298] sm:$0xff] %v778_v40  ;;  %v668_v42 = vpop.f32.mrb[12].mxu0  ;;  %1487 = vmatprep.mubr.bf16.mxu1 %v2172_v5 }
 0x192   : > { %v670_v12 = vpop.f32.mrb[13].mxu0  ;;  %v669_v44 = vadd.f32 %v668_v42, %v2777_v41 }
 0x193   : > { %v781_v14 = vpop.f32.mrb[12].mxu1  ;;  %v671_v46 = vadd.f32 %v670_v12, %v2777_v41  ;;  %v672_v48 = vpop.f32.mrb[14].mxu0 }
 0x194   : > { %v782_v49 = vadd.f32 %v781_v14, %v2777_v41  ;;  %1604 = vst [vmem:[%s2710_s9 + $0x300] sm:$0xff] %v669_v44  ;;  %v783_v24 = vpop.f32.mrb[13].mxu1  ;;  %v673_v50 = vadd.f32 %v672_v48, %v2784_v43  ;;  %v674_v51 = vpop.f32.mrb[15].mxu0 }
 0x195   : > { %1605 = vst [vmem:[%s2710_s9 + $0x308] sm:$0xff] %v671_v46  ;;  %v784_v52 = vadd.f32 %v783_v24, %v2777_v41  ;;  %v675_v53 = vadd.f32 %v674_v51, %v2784_v43  ;;  %v785_v54 = vpop.f32.mrb[14].mxu1 }
 0x196   : > { %1606 = vst [vmem:[%s2710_s9 + $0x310] sm:$0xff] %v782_v49  ;;  %1620 = vst [vmem:[%s2710_s9 + $0x380] sm:$0xff] %v673_v50  ;;  %v786_v55 = vadd.f32 %v785_v54, %v2784_v43  ;;  %v787_v56 = vpop.f32.mrb[15].mxu1  ;;  %1946 = vmatmul.mubr.msk.bf16.gmra.mrb[120].mxu0 %vm579_vm2, %v2539_v30 }
 0x197   : > { %1607 = vst [vmem:[%s2710_s9 + $0x318] sm:$0xff] %v784_v52  ;;  %1621 = vst [vmem:[%s2710_s9 + $0x388] sm:$0xff] %v675_v53  ;;  %v788_v57 = vadd.f32 %v787_v56, %v2784_v43  ;;  %1384 = vmatprep.mubr.bf16.mxu0 %v2172_v5  ;;  %v2871_v56 = vpop.permute.xlu1 %531 }
 0x198   : > { %1622 = vst [vmem:[%s2710_s9 + $0x390] sm:$0xff] %v786_v55  ;;  %1954 = vmatmul.mubr.msk.bf16.gmra.mrb[120].mxu1 %vm579_vm2, %v2539_v30 }
 0x199   : > { %1623 = vst [vmem:[%s2710_s9 + $0x398] sm:$0xff] %v788_v57  ;;  %v678_v59 = vpop.f32.mrb[16].mxu0  ;;  %1497 = vmatprep.mubr.bf16.mxu1 %v2172_v5 }
 0x19a   : > { %v680_v61 = vpop.f32.mrb[17].mxu0  ;;  %v679_v62 = vadd.f32 %v678_v59, %v2803_v58  ;;  %v2875_v59 = vpop.permute.xlu0 %536 }
 0x19b   : > { %v791_v0 = vpop.f32.mrb[16].mxu1  ;;  %v681_v2 = vadd.f32 %v680_v61, %v2803_v58  ;;  %v682_v3 = vpop.f32.mrb[18].mxu0 }
 0x19c   : > { %v792_v4 = vadd.f32 %v791_v0, %v2803_v58  ;;  %1636 = vst [vmem:[%s2710_s9 + $0x400] sm:$0xff] %v679_v62  ;;  %v793_v30 = vpop.f32.mrb[17].mxu1  ;;  %v683_v6 = vadd.f32 %v682_v3, %v2810_v60  ;;  %v684_v7 = vpop.f32.mrb[19].mxu0 }
 0x19d   : > { %1637 = vst [vmem:[%s2710_s9 + $0x408] sm:$0xff] %v681_v2  ;;  %v794_v5 = vadd.f32 %v793_v30, %v2803_v58  ;;  %v685_v9 = vadd.f32 %v684_v7, %v2810_v60  ;;  %v795_v11 = vpop.f32.mrb[18].mxu1 }
 0x19e   : > { %1638 = vst [vmem:[%s2710_s9 + $0x410] sm:$0xff] %v792_v4  ;;  %1652 = vst [vmem:[%s2710_s9 + $0x480] sm:$0xff] %v683_v6  ;;  %v796_v16 = vadd.f32 %v795_v11, %v2810_v60  ;;  %v797_v18 = vpop.f32.mrb[19].mxu1  ;;  %1947 = vmatmul.mubr.msk.bf16.gmra.mrb[124].mxu0 %vm579_vm2, %v2550_v31 }
 0x19f   : > { %1639 = vst [vmem:[%s2710_s9 + $0x418] sm:$0xff] %v794_v5  ;;  %1653 = vst [vmem:[%s2710_s9 + $0x488] sm:$0xff] %v685_v9  ;;  %v798_v19 = vadd.f32 %v797_v18, %v2810_v60 }
 0x1a0   : > { %1654 = vst [vmem:[%s2710_s9 + $0x490] sm:$0xff] %v796_v16  ;;  %1955 = vmatmul.mubr.msk.bf16.gmra.mrb[124].mxu1 %vm579_vm2, %v2550_v31 }
 0x1a1   : > { %1655 = vst [vmem:[%s2710_s9 + $0x498] sm:$0xff] %v798_v19  ;;  %v688_v21 = vpop.f32.mrb[20].mxu0 }
 0x1a2   : > { %v690_v23 = vpop.f32.mrb[21].mxu0  ;;  %v689_v25 = vadd.f32 %v688_v21, %v2829_v20 }
 0x1a3   : > { %v801_v27 = vpop.f32.mrb[20].mxu1  ;;  %v691_v29 = vadd.f32 %v690_v23, %v2829_v20  ;;  %v692_v32 = vpop.f32.mrb[22].mxu0 }
 0x1a4   : > { %v802_v33 = vadd.f32 %v801_v27, %v2829_v20  ;;  %1668 = vst [vmem:[%s2710_s9 + $0x500] sm:$0xff] %v689_v25  ;;  %v803_v31 = vpop.f32.mrb[21].mxu1  ;;  %v693_v34 = vadd.f32 %v692_v32, %v2835_v22  ;;  %v694_v35 = vpop.f32.mrb[23].mxu0 }
 0x1a5   : > { %1669 = vst [vmem:[%s2710_s9 + $0x508] sm:$0xff] %v691_v29  ;;  %v804_v36 = vadd.f32 %v803_v31, %v2829_v20  ;;  %v695_v13 = vadd.f32 %v694_v35, %v2835_v22  ;;  %v805_v8 = vpop.f32.mrb[22].mxu1 }
 0x1a6   : > { %1670 = vst [vmem:[%s2710_s9 + $0x510] sm:$0xff] %v802_v33  ;;  %1684 = vst [vmem:[%s2710_s9 + $0x580] sm:$0xff] %v693_v34  ;;  %v806_v37 = vadd.f32 %v805_v8, %v2835_v22  ;;  %v807_v10 = vpop.f32.mrb[23].mxu1 }
 0x1a7   : > { %1671 = vst [vmem:[%s2710_s9 + $0x518] sm:$0xff] %v804_v36  ;;  %1685 = vst [vmem:[%s2710_s9 + $0x588] sm:$0xff] %v695_v13  ;;  %v808_v15 = vadd.f32 %v807_v10, %v2835_v22 }
 0x1a8   : > { %1686 = vst [vmem:[%s2710_s9 + $0x590] sm:$0xff] %v806_v37 }
 0x1a9   : > { %1687 = vst [vmem:[%s2710_s9 + $0x598] sm:$0xff] %v808_v15  ;;  %v698_v38 = vpop.f32.mrb[24].mxu0 }
 0x1aa   : > { %v700_v40 = vpop.f32.mrb[25].mxu0  ;;  %v699_v42 = vadd.f32 %v698_v38, %v2851_v17 }
 0x1ab   : > { %v811_v12 = vpop.f32.mrb[24].mxu1  ;;  %v701_v44 = vadd.f32 %v700_v40, %v2851_v17  ;;  %v702_v14 = vpop.f32.mrb[26].mxu0 }
 0x1ac   : > { %v812_v46 = vadd.f32 %v811_v12, %v2851_v17  ;;  %1700 = vst [vmem:[%s2710_s9 + $0x600] sm:$0xff] %v699_v42  ;;  %v813_v48 = vpop.f32.mrb[25].mxu1  ;;  %v703_v49 = vadd.f32 %v702_v14, %v2855_v39  ;;  %v704_v24 = vpop.f32.mrb[27].mxu0 }
 0x1ad   : > { %1701 = vst [vmem:[%s2710_s9 + $0x608] sm:$0xff] %v701_v44  ;;  %v814_v50 = vadd.f32 %v813_v48, %v2851_v17  ;;  %v705_v51 = vadd.f32 %v704_v24, %v2855_v39  ;;  %v815_v52 = vpop.f32.mrb[26].mxu1 }
 0x1ae   : > { %1702 = vst [vmem:[%s2710_s9 + $0x610] sm:$0xff] %v812_v46  ;;  %1716 = vst [vmem:[%s2710_s9 + $0x680] sm:$0xff] %v703_v49  ;;  %v816_v53 = vadd.f32 %v815_v52, %v2855_v39  ;;  %v817_v54 = vpop.f32.mrb[27].mxu1 }
 0x1af   : > { %1703 = vst [vmem:[%s2710_s9 + $0x618] sm:$0xff] %v814_v50  ;;  %1717 = vst [vmem:[%s2710_s9 + $0x688] sm:$0xff] %v705_v51  ;;  %v818_v55 = vadd.f32 %v817_v54, %v2855_v39 }
 0x1b0   : > { %1718 = vst [vmem:[%s2710_s9 + $0x690] sm:$0xff] %v816_v53 }
 0x1b1   : > { %1719 = vst [vmem:[%s2710_s9 + $0x698] sm:$0xff] %v818_v55  ;;  %v708_v57 = vpop.f32.mrb[28].mxu0 }
 0x1b2   : > { %v710_v61 = vpop.f32.mrb[29].mxu0  ;;  %v709_v62 = vadd.f32 %v708_v57, %v2871_v56 }
 0x1b3   : > { %v821_v0 = vpop.f32.mrb[28].mxu1  ;;  %v711_v2 = vadd.f32 %v710_v61, %v2871_v56  ;;  %v712_v3 = vpop.f32.mrb[30].mxu0 }
 0x1b4   : > { %v822_v4 = vadd.f32 %v821_v0, %v2871_v56  ;;  %1732 = vst [vmem:[%s2710_s9 + $0x700] sm:$0xff] %v709_v62  ;;  %v823_v30 = vpop.f32.mrb[29].mxu1  ;;  %v713_v6 = vadd.f32 %v712_v3, %v2875_v59  ;;  %v714_v7 = vpop.f32.mrb[31].mxu0 }
 0x1b5   : > { %1733 = vst [vmem:[%s2710_s9 + $0x708] sm:$0xff] %v711_v2  ;;  %v824_v5 = vadd.f32 %v823_v30, %v2871_v56  ;;  %v715_v9 = vadd.f32 %v714_v7, %v2875_v59  ;;  %v825_v11 = vpop.f32.mrb[30].mxu1 }
 0x1b6   : > { %1734 = vst [vmem:[%s2710_s9 + $0x710] sm:$0xff] %v822_v4  ;;  %1748 = vst [vmem:[%s2710_s9 + $0x780] sm:$0xff] %v713_v6  ;;  %v826_v16 = vadd.f32 %v825_v11, %v2875_v59  ;;  %v827_v18 = vpop.f32.mrb[31].mxu1 }
 0x1b7   : > { %1735 = vst [vmem:[%s2710_s9 + $0x718] sm:$0xff] %v824_v5  ;;  %1749 = vst [vmem:[%s2710_s9 + $0x788] sm:$0xff] %v715_v9  ;;  %v828_v19 = vadd.f32 %v827_v18, %v2875_v59 }
 0x1b8   : > { %1750 = vst [vmem:[%s2710_s9 + $0x790] sm:$0xff] %v826_v16 }
 0x1b9   : > { %1751 = vst [vmem:[%s2710_s9 + $0x798] sm:$0xff] %v828_v19  ;;  %v864_v21 = vpop.f32.mrb[32].mxu0 }
 0x1ba   : > { %v865_v23 = vadd.f32 %v864_v21, %v2699_v45  ;;  %v866_v25 = vpop.f32.mrb[33].mxu0 }
 0x1bb   : > { %v867_v27 = vadd.f32 %v866_v25, %v2699_v45  ;;  %v977_v29 = vpop.f32.mrb[32].mxu1  ;;  %v868_v32 = vpop.f32.mrb[34].mxu0 }
 0x1bc   : > { %1512 = vst [vmem:[%s2710_s9 + $0x20] sm:$0xff] %v865_v23  ;;  %v978_v33 = vadd.f32 %v977_v29, %v2699_v45  ;;  %v869_v31 = vadd.f32 %v868_v32, %v2704_v47  ;;  %v979_v34 = vpop.f32.mrb[33].mxu1  ;;  %v870_v35 = vpop.f32.mrb[35].mxu0 }
 0x1bd   : > { %1513 = vst [vmem:[%s2710_s9 + $0x28] sm:$0xff] %v867_v27  ;;  %v980_v36 = vadd.f32 %v979_v34, %v2699_v45  ;;  %v871_v13 = vadd.f32 %v870_v35, %v2704_v47  ;;  %v981_v8 = vpop.f32.mrb[34].mxu1 }
 0x1be   : > { %1514 = vst [vmem:[%s2710_s9 + $0x30] sm:$0xff] %v978_v33  ;;  %1528 = vst [vmem:[%s2710_s9 + $0xa0] sm:$0xff] %v869_v31  ;;  %v982_v37 = vadd.f32 %v981_v8, %v2704_v47  ;;  %v983_v10 = vpop.f32.mrb[35].mxu1 }
 0x1bf   : > { %1515 = vst [vmem:[%s2710_s9 + $0x38] sm:$0xff] %v980_v36  ;;  %1529 = vst [vmem:[%s2710_s9 + $0xa8] sm:$0xff] %v871_v13  ;;  %v984_v15 = vadd.f32 %v983_v10, %v2704_v47 }
 0x1c0   : > { %1530 = vst [vmem:[%s2710_s9 + $0xb0] sm:$0xff] %v982_v37 }
 0x1c1   : > { %1531 = vst [vmem:[%s2710_s9 + $0xb8] sm:$0xff] %v984_v15  ;;  %v874_v38 = vpop.f32.mrb[36].mxu0 }
 0x1c2   : > { %v875_v40 = vadd.f32 %v874_v38, %v2725_v63  ;;  %v876_v42 = vpop.f32.mrb[37].mxu0 }
 0x1c3   : > { %v877_v12 = vadd.f32 %v876_v42, %v2725_v63  ;;  %v987_v44 = vpop.f32.mrb[36].mxu1  ;;  %v878_v14 = vpop.f32.mrb[38].mxu0 }
 0x1c4   : > { %1544 = vst [vmem:[%s2710_s9 + $0x120] sm:$0xff] %v875_v40  ;;  %v988_v46 = vadd.f32 %v987_v44, %v2725_v63  ;;  %v879_v48 = vadd.f32 %v878_v14, %v2732_v1  ;;  %v989_v49 = vpop.f32.mrb[37].mxu1  ;;  %v880_v24 = vpop.f32.mrb[39].mxu0 }
 0x1c5   : > { %1545 = vst [vmem:[%s2710_s9 + $0x128] sm:$0xff] %v877_v12  ;;  %v990_v50 = vadd.f32 %v989_v49, %v2725_v63  ;;  %v881_v51 = vadd.f32 %v880_v24, %v2732_v1  ;;  %v991_v52 = vpop.f32.mrb[38].mxu1 }
 0x1c6   : > { %1546 = vst [vmem:[%s2710_s9 + $0x130] sm:$0xff] %v988_v46  ;;  %1560 = vst [vmem:[%s2710_s9 + $0x1a0] sm:$0xff] %v879_v48  ;;  %v992_v53 = vadd.f32 %v991_v52, %v2732_v1  ;;  %v993_v54 = vpop.f32.mrb[39].mxu1 }
 0x1c7   : > { %1547 = vst [vmem:[%s2710_s9 + $0x138] sm:$0xff] %v990_v50  ;;  %1561 = vst [vmem:[%s2710_s9 + $0x1a8] sm:$0xff] %v881_v51  ;;  %v994_v55 = vadd.f32 %v993_v54, %v2732_v1 }
 0x1c8   : > { %1562 = vst [vmem:[%s2710_s9 + $0x1b0] sm:$0xff] %v992_v53 }
 0x1c9   : > { %1563 = vst [vmem:[%s2710_s9 + $0x1b8] sm:$0xff] %v994_v55  ;;  %v884_v57 = vpop.f32.mrb[40].mxu0 }
 0x1ca   : > { %v885_v61 = vadd.f32 %v884_v57, %v2751_v26  ;;  %v886_v62 = vpop.f32.mrb[41].mxu0 }
 0x1cb   : > { %v887_v0 = vadd.f32 %v886_v62, %v2751_v26  ;;  %v997_v2 = vpop.f32.mrb[40].mxu1  ;;  %v888_v3 = vpop.f32.mrb[42].mxu0 }
 0x1cc   : > { %1576 = vst [vmem:[%s2710_s9 + $0x220] sm:$0xff] %v885_v61  ;;  %v998_v4 = vadd.f32 %v997_v2, %v2751_v26  ;;  %v889_v30 = vadd.f32 %v888_v3, %v2758_v28  ;;  %v999_v6 = vpop.f32.mrb[41].mxu1  ;;  %v890_v7 = vpop.f32.mrb[43].mxu0 }
 0x1cd   : > { %1577 = vst [vmem:[%s2710_s9 + $0x228] sm:$0xff] %v887_v0  ;;  %v1000_v5 = vadd.f32 %v999_v6, %v2751_v26  ;;  %v891_v9 = vadd.f32 %v890_v7, %v2758_v28  ;;  %v1001_v11 = vpop.f32.mrb[42].mxu1 }
 0x1ce   : > { %1578 = vst [vmem:[%s2710_s9 + $0x230] sm:$0xff] %v998_v4  ;;  %1592 = vst [vmem:[%s2710_s9 + $0x2a0] sm:$0xff] %v889_v30  ;;  %v1002_v16 = vadd.f32 %v1001_v11, %v2758_v28  ;;  %v1003_v18 = vpop.f32.mrb[43].mxu1 }
 0x1cf   : > { %1579 = vst [vmem:[%s2710_s9 + $0x238] sm:$0xff] %v1000_v5  ;;  %1593 = vst [vmem:[%s2710_s9 + $0x2a8] sm:$0xff] %v891_v9  ;;  %v1004_v19 = vadd.f32 %v1003_v18, %v2758_v28 }
 0x1d0   : > { %1594 = vst [vmem:[%s2710_s9 + $0x2b0] sm:$0xff] %v1002_v16 }
 0x1d1   : > { %1595 = vst [vmem:[%s2710_s9 + $0x2b8] sm:$0xff] %v1004_v19  ;;  %v894_v21 = vpop.f32.mrb[44].mxu0 }
 0x1d2   : > { %v895_v23 = vadd.f32 %v894_v21, %v2777_v41  ;;  %v896_v25 = vpop.f32.mrb[45].mxu0 }
 0x1d3   : > { %v897_v27 = vadd.f32 %v896_v25, %v2777_v41  ;;  %v1007_v29 = vpop.f32.mrb[44].mxu1  ;;  %v898_v32 = vpop.f32.mrb[46].mxu0 }
 0x1d4   : > { %1608 = vst [vmem:[%s2710_s9 + $0x320] sm:$0xff] %v895_v23  ;;  %v1008_v33 = vadd.f32 %v1007_v29, %v2777_v41  ;;  %v899_v31 = vadd.f32 %v898_v32, %v2784_v43  ;;  %v1009_v34 = vpop.f32.mrb[45].mxu1  ;;  %v900_v35 = vpop.f32.mrb[47].mxu0 }
 0x1d5   : > { %1609 = vst [vmem:[%s2710_s9 + $0x328] sm:$0xff] %v897_v27  ;;  %v1010_v36 = vadd.f32 %v1009_v34, %v2777_v41  ;;  %v901_v13 = vadd.f32 %v900_v35, %v2784_v43  ;;  %v1011_v8 = vpop.f32.mrb[46].mxu1 }
 0x1d6   : > { %1610 = vst [vmem:[%s2710_s9 + $0x330] sm:$0xff] %v1008_v33  ;;  %1624 = vst [vmem:[%s2710_s9 + $0x3a0] sm:$0xff] %v899_v31  ;;  %v1012_v37 = vadd.f32 %v1011_v8, %v2784_v43  ;;  %v1013_v10 = vpop.f32.mrb[47].mxu1 }
 0x1d7   : > { %1611 = vst [vmem:[%s2710_s9 + $0x338] sm:$0xff] %v1010_v36  ;;  %1625 = vst [vmem:[%s2710_s9 + $0x3a8] sm:$0xff] %v901_v13  ;;  %v1014_v15 = vadd.f32 %v1013_v10, %v2784_v43 }
 0x1d8   : > { %1626 = vst [vmem:[%s2710_s9 + $0x3b0] sm:$0xff] %v1012_v37 }
 0x1d9   : > { %1627 = vst [vmem:[%s2710_s9 + $0x3b8] sm:$0xff] %v1014_v15  ;;  %v904_v38 = vpop.f32.mrb[48].mxu0 }
 0x1da   : > { %v905_v40 = vadd.f32 %v904_v38, %v2803_v58  ;;  %v906_v42 = vpop.f32.mrb[49].mxu0 }
 0x1db   : > { %v907_v12 = vadd.f32 %v906_v42, %v2803_v58  ;;  %v1017_v44 = vpop.f32.mrb[48].mxu1  ;;  %v908_v14 = vpop.f32.mrb[50].mxu0 }
 0x1dc   : > { %1640 = vst [vmem:[%s2710_s9 + $0x420] sm:$0xff] %v905_v40  ;;  %v1018_v46 = vadd.f32 %v1017_v44, %v2803_v58  ;;  %v909_v48 = vadd.f32 %v908_v14, %v2810_v60  ;;  %v1019_v49 = vpop.f32.mrb[49].mxu1  ;;  %v910_v24 = vpop.f32.mrb[51].mxu0 }
 0x1dd   : > { %1641 = vst [vmem:[%s2710_s9 + $0x428] sm:$0xff] %v907_v12  ;;  %v1020_v50 = vadd.f32 %v1019_v49, %v2803_v58  ;;  %v911_v51 = vadd.f32 %v910_v24, %v2810_v60  ;;  %v1021_v52 = vpop.f32.mrb[50].mxu1 }
 0x1de   : > { %1642 = vst [vmem:[%s2710_s9 + $0x430] sm:$0xff] %v1018_v46  ;;  %1656 = vst [vmem:[%s2710_s9 + $0x4a0] sm:$0xff] %v909_v48  ;;  %v1022_v53 = vadd.f32 %v1021_v52, %v2810_v60  ;;  %v1023_v54 = vpop.f32.mrb[51].mxu1 }
 0x1df   : > { %1643 = vst [vmem:[%s2710_s9 + $0x438] sm:$0xff] %v1020_v50  ;;  %1657 = vst [vmem:[%s2710_s9 + $0x4a8] sm:$0xff] %v911_v51  ;;  %v1024_v55 = vadd.f32 %v1023_v54, %v2810_v60 }
 0x1e0   : > { %1658 = vst [vmem:[%s2710_s9 + $0x4b0] sm:$0xff] %v1022_v53 }
 0x1e1   : > { %1659 = vst [vmem:[%s2710_s9 + $0x4b8] sm:$0xff] %v1024_v55  ;;  %v914_v57 = vpop.f32.mrb[52].mxu0 }
 0x1e2   : > { %v915_v61 = vadd.f32 %v914_v57, %v2829_v20  ;;  %v916_v62 = vpop.f32.mrb[53].mxu0 }
 0x1e3   : > { %v917_v0 = vadd.f32 %v916_v62, %v2829_v20  ;;  %v1027_v2 = vpop.f32.mrb[52].mxu1  ;;  %v918_v3 = vpop.f32.mrb[54].mxu0 }
 0x1e4   : > { %1672 = vst [vmem:[%s2710_s9 + $0x520] sm:$0xff] %v915_v61  ;;  %v1028_v4 = vadd.f32 %v1027_v2, %v2829_v20  ;;  %v919_v30 = vadd.f32 %v918_v3, %v2835_v22  ;;  %v1029_v6 = vpop.f32.mrb[53].mxu1  ;;  %v920_v7 = vpop.f32.mrb[55].mxu0 }
 0x1e5   : > { %1673 = vst [vmem:[%s2710_s9 + $0x528] sm:$0xff] %v917_v0  ;;  %v1030_v5 = vadd.f32 %v1029_v6, %v2829_v20  ;;  %v921_v9 = vadd.f32 %v920_v7, %v2835_v22  ;;  %v1031_v11 = vpop.f32.mrb[54].mxu1 }
 0x1e6   : > { %1674 = vst [vmem:[%s2710_s9 + $0x530] sm:$0xff] %v1028_v4  ;;  %1688 = vst [vmem:[%s2710_s9 + $0x5a0] sm:$0xff] %v919_v30  ;;  %v1032_v16 = vadd.f32 %v1031_v11, %v2835_v22  ;;  %v1033_v18 = vpop.f32.mrb[55].mxu1 }
 0x1e7   : > { %1675 = vst [vmem:[%s2710_s9 + $0x538] sm:$0xff] %v1030_v5  ;;  %1689 = vst [vmem:[%s2710_s9 + $0x5a8] sm:$0xff] %v921_v9  ;;  %v1034_v19 = vadd.f32 %v1033_v18, %v2835_v22 }
 0x1e8   : > { %1690 = vst [vmem:[%s2710_s9 + $0x5b0] sm:$0xff] %v1032_v16 }
 0x1e9   : > { %1691 = vst [vmem:[%s2710_s9 + $0x5b8] sm:$0xff] %v1034_v19  ;;  %v924_v21 = vpop.f32.mrb[56].mxu0 }
 0x1ea   : > { %v925_v23 = vadd.f32 %v924_v21, %v2851_v17  ;;  %v926_v25 = vpop.f32.mrb[57].mxu0 }
 0x1eb   : > { %v927_v27 = vadd.f32 %v926_v25, %v2851_v17  ;;  %v1037_v29 = vpop.f32.mrb[56].mxu1  ;;  %v928_v32 = vpop.f32.mrb[58].mxu0 }
 0x1ec   : > { %1704 = vst [vmem:[%s2710_s9 + $0x620] sm:$0xff] %v925_v23  ;;  %v1038_v33 = vadd.f32 %v1037_v29, %v2851_v17  ;;  %v929_v31 = vadd.f32 %v928_v32, %v2855_v39  ;;  %v1039_v34 = vpop.f32.mrb[57].mxu1  ;;  %v930_v35 = vpop.f32.mrb[59].mxu0 }
 0x1ed   : > { %1705 = vst [vmem:[%s2710_s9 + $0x628] sm:$0xff] %v927_v27  ;;  %v1040_v36 = vadd.f32 %v1039_v34, %v2851_v17  ;;  %v931_v13 = vadd.f32 %v930_v35, %v2855_v39  ;;  %v1041_v8 = vpop.f32.mrb[58].mxu1 }
 0x1ee   : > { %1706 = vst [vmem:[%s2710_s9 + $0x630] sm:$0xff] %v1038_v33  ;;  %1720 = vst [vmem:[%s2710_s9 + $0x6a0] sm:$0xff] %v929_v31  ;;  %v1042_v37 = vadd.f32 %v1041_v8, %v2855_v39  ;;  %v1043_v10 = vpop.f32.mrb[59].mxu1 }
 0x1ef   : > { %1707 = vst [vmem:[%s2710_s9 + $0x638] sm:$0xff] %v1040_v36  ;;  %1721 = vst [vmem:[%s2710_s9 + $0x6a8] sm:$0xff] %v931_v13  ;;  %v1044_v15 = vadd.f32 %v1043_v10, %v2855_v39 }
 0x1f0   : > { %1722 = vst [vmem:[%s2710_s9 + $0x6b0] sm:$0xff] %v1042_v37 }
 0x1f1   : > { %1723 = vst [vmem:[%s2710_s9 + $0x6b8] sm:$0xff] %v1044_v15  ;;  %v934_v38 = vpop.f32.mrb[60].mxu0 }
 0x1f2   : > { %v935_v40 = vadd.f32 %v934_v38, %v2871_v56  ;;  %v936_v42 = vpop.f32.mrb[61].mxu0 }
 0x1f3   : > { %v937_v12 = vadd.f32 %v936_v42, %v2871_v56  ;;  %v1047_v44 = vpop.f32.mrb[60].mxu1  ;;  %v938_v14 = vpop.f32.mrb[62].mxu0 }
 0x1f4   : > { %1736 = vst [vmem:[%s2710_s9 + $0x720] sm:$0xff] %v935_v40  ;;  %v1048_v46 = vadd.f32 %v1047_v44, %v2871_v56  ;;  %v939_v48 = vadd.f32 %v938_v14, %v2875_v59  ;;  %v1049_v49 = vpop.f32.mrb[61].mxu1  ;;  %v940_v24 = vpop.f32.mrb[63].mxu0 }
 0x1f5   : > { %1737 = vst [vmem:[%s2710_s9 + $0x728] sm:$0xff] %v937_v12  ;;  %v1050_v50 = vadd.f32 %v1049_v49, %v2871_v56  ;;  %v941_v51 = vadd.f32 %v940_v24, %v2875_v59  ;;  %v1051_v52 = vpop.f32.mrb[62].mxu1 }
 0x1f6   : > { %1738 = vst [vmem:[%s2710_s9 + $0x730] sm:$0xff] %v1048_v46  ;;  %1752 = vst [vmem:[%s2710_s9 + $0x7a0] sm:$0xff] %v939_v48  ;;  %v1052_v53 = vadd.f32 %v1051_v52, %v2875_v59  ;;  %v1053_v54 = vpop.f32.mrb[63].mxu1 }
 0x1f7   : > { %1739 = vst [vmem:[%s2710_s9 + $0x738] sm:$0xff] %v1050_v50  ;;  %1753 = vst [vmem:[%s2710_s9 + $0x7a8] sm:$0xff] %v941_v51  ;;  %v1054_v55 = vadd.f32 %v1053_v54, %v2875_v59 }
 0x1f8   : > { %1754 = vst [vmem:[%s2710_s9 + $0x7b0] sm:$0xff] %v1052_v53 }
 0x1f9   : > { %1755 = vst [vmem:[%s2710_s9 + $0x7b8] sm:$0xff] %v1054_v55  ;;  %v1090_v57 = vpop.f32.mrb[64].mxu0 }
 0x1fa   : > { %v1091_v61 = vadd.f32 %v1090_v57, %v2699_v45  ;;  %v1092_v62 = vpop.f32.mrb[65].mxu0 }
 0x1fb   : > { %v1093_v0 = vadd.f32 %v1092_v62, %v2699_v45  ;;  %v1203_v2 = vpop.f32.mrb[64].mxu1  ;;  %v1094_v3 = vpop.f32.mrb[66].mxu0 }
 0x1fc   : > { %1516 = vst [vmem:[%s2710_s9 + $0x40] sm:$0xff] %v1091_v61  ;;  %v1204_v4 = vadd.f32 %v1203_v2, %v2699_v45  ;;  %v1095_v30 = vadd.f32 %v1094_v3, %v2704_v47  ;;  %v1205_v6 = vpop.f32.mrb[65].mxu1  ;;  %v1096_v7 = vpop.f32.mrb[67].mxu0 }
 0x1fd   : > { %1517 = vst [vmem:[%s2710_s9 + $0x48] sm:$0xff] %v1093_v0  ;;  %v1206_v5 = vadd.f32 %v1205_v6, %v2699_v45  ;;  %v1097_v9 = vadd.f32 %v1096_v7, %v2704_v47  ;;  %v1207_v11 = vpop.f32.mrb[66].mxu1 }
 0x1fe   : > { %1518 = vst [vmem:[%s2710_s9 + $0x50] sm:$0xff] %v1204_v4  ;;  %1532 = vst [vmem:[%s2710_s9 + $0xc0] sm:$0xff] %v1095_v30  ;;  %v1208_v16 = vadd.f32 %v1207_v11, %v2704_v47  ;;  %v1209_v18 = vpop.f32.mrb[67].mxu1 }
 0x1ff   : > { %1519 = vst [vmem:[%s2710_s9 + $0x58] sm:$0xff] %v1206_v5  ;;  %1533 = vst [vmem:[%s2710_s9 + $0xc8] sm:$0xff] %v1097_v9  ;;  %v1210_v19 = vadd.f32 %v1209_v18, %v2704_v47 }
 0x200   : > { %1534 = vst [vmem:[%s2710_s9 + $0xd0] sm:$0xff] %v1208_v16 }
 0x201   : > { %1535 = vst [vmem:[%s2710_s9 + $0xd8] sm:$0xff] %v1210_v19  ;;  %v1100_v21 = vpop.f32.mrb[68].mxu0 }
 0x202   : > { %v1101_v23 = vadd.f32 %v1100_v21, %v2725_v63  ;;  %v1102_v25 = vpop.f32.mrb[69].mxu0 }
 0x203   : > { %v1103_v27 = vadd.f32 %v1102_v25, %v2725_v63  ;;  %v1213_v29 = vpop.f32.mrb[68].mxu1  ;;  %v1104_v32 = vpop.f32.mrb[70].mxu0 }
 0x204   : > { %1548 = vst [vmem:[%s2710_s9 + $0x140] sm:$0xff] %v1101_v23  ;;  %v1214_v33 = vadd.f32 %v1213_v29, %v2725_v63  ;;  %v1105_v31 = vadd.f32 %v1104_v32, %v2732_v1  ;;  %v1215_v34 = vpop.f32.mrb[69].mxu1  ;;  %v1106_v35 = vpop.f32.mrb[71].mxu0 }
 0x205   : > { %1549 = vst [vmem:[%s2710_s9 + $0x148] sm:$0xff] %v1103_v27  ;;  %v1216_v36 = vadd.f32 %v1215_v34, %v2725_v63  ;;  %v1107_v13 = vadd.f32 %v1106_v35, %v2732_v1  ;;  %v1217_v8 = vpop.f32.mrb[70].mxu1 }
 0x206   : > { %1550 = vst [vmem:[%s2710_s9 + $0x150] sm:$0xff] %v1214_v33  ;;  %1564 = vst [vmem:[%s2710_s9 + $0x1c0] sm:$0xff] %v1105_v31  ;;  %v1218_v37 = vadd.f32 %v1217_v8, %v2732_v1  ;;  %v1219_v10 = vpop.f32.mrb[71].mxu1 }
 0x207   : > { %1551 = vst [vmem:[%s2710_s9 + $0x158] sm:$0xff] %v1216_v36  ;;  %1565 = vst [vmem:[%s2710_s9 + $0x1c8] sm:$0xff] %v1107_v13  ;;  %v1220_v15 = vadd.f32 %v1219_v10, %v2732_v1 }
 0x208   : > { %1566 = vst [vmem:[%s2710_s9 + $0x1d0] sm:$0xff] %v1218_v37 }
 0x209   : > { %1567 = vst [vmem:[%s2710_s9 + $0x1d8] sm:$0xff] %v1220_v15  ;;  %v1110_v38 = vpop.f32.mrb[72].mxu0 }
 0x20a   : > { %v1111_v40 = vadd.f32 %v1110_v38, %v2751_v26  ;;  %v1112_v42 = vpop.f32.mrb[73].mxu0 }
 0x20b   : > { %v1113_v12 = vadd.f32 %v1112_v42, %v2751_v26  ;;  %v1223_v44 = vpop.f32.mrb[72].mxu1  ;;  %v1114_v14 = vpop.f32.mrb[74].mxu0 }
 0x20c   : > { %1580 = vst [vmem:[%s2710_s9 + $0x240] sm:$0xff] %v1111_v40  ;;  %v1224_v46 = vadd.f32 %v1223_v44, %v2751_v26  ;;  %v1115_v48 = vadd.f32 %v1114_v14, %v2758_v28  ;;  %v1225_v49 = vpop.f32.mrb[73].mxu1  ;;  %v1116_v24 = vpop.f32.mrb[75].mxu0 }
 0x20d   : > { %1581 = vst [vmem:[%s2710_s9 + $0x248] sm:$0xff] %v1113_v12  ;;  %v1226_v50 = vadd.f32 %v1225_v49, %v2751_v26  ;;  %v1117_v51 = vadd.f32 %v1116_v24, %v2758_v28  ;;  %v1227_v52 = vpop.f32.mrb[74].mxu1 }
 0x20e   : > { %1582 = vst [vmem:[%s2710_s9 + $0x250] sm:$0xff] %v1224_v46  ;;  %1596 = vst [vmem:[%s2710_s9 + $0x2c0] sm:$0xff] %v1115_v48  ;;  %v1228_v53 = vadd.f32 %v1227_v52, %v2758_v28  ;;  %v1229_v54 = vpop.f32.mrb[75].mxu1 }
 0x20f   : > { %1583 = vst [vmem:[%s2710_s9 + $0x258] sm:$0xff] %v1226_v50  ;;  %1597 = vst [vmem:[%s2710_s9 + $0x2c8] sm:$0xff] %v1117_v51  ;;  %v1230_v55 = vadd.f32 %v1229_v54, %v2758_v28 }
 0x210   : > { %1598 = vst [vmem:[%s2710_s9 + $0x2d0] sm:$0xff] %v1228_v53 }
 0x211   : > { %1599 = vst [vmem:[%s2710_s9 + $0x2d8] sm:$0xff] %v1230_v55  ;;  %v1120_v57 = vpop.f32.mrb[76].mxu0 }
 0x212   : > { %v1121_v61 = vadd.f32 %v1120_v57, %v2777_v41  ;;  %v1122_v62 = vpop.f32.mrb[77].mxu0 }
 0x213   : > { %v1123_v0 = vadd.f32 %v1122_v62, %v2777_v41  ;;  %v1233_v2 = vpop.f32.mrb[76].mxu1  ;;  %v1124_v3 = vpop.f32.mrb[78].mxu0 }
 0x214   : > { %1612 = vst [vmem:[%s2710_s9 + $0x340] sm:$0xff] %v1121_v61  ;;  %v1234_v4 = vadd.f32 %v1233_v2, %v2777_v41  ;;  %v1125_v30 = vadd.f32 %v1124_v3, %v2784_v43  ;;  %v1235_v6 = vpop.f32.mrb[77].mxu1  ;;  %v1126_v7 = vpop.f32.mrb[79].mxu0 }
 0x215   : > { %1613 = vst [vmem:[%s2710_s9 + $0x348] sm:$0xff] %v1123_v0  ;;  %v1236_v5 = vadd.f32 %v1235_v6, %v2777_v41  ;;  %v1127_v9 = vadd.f32 %v1126_v7, %v2784_v43  ;;  %v1237_v11 = vpop.f32.mrb[78].mxu1 }
 0x216   : > { %1614 = vst [vmem:[%s2710_s9 + $0x350] sm:$0xff] %v1234_v4  ;;  %1628 = vst [vmem:[%s2710_s9 + $0x3c0] sm:$0xff] %v1125_v30  ;;  %v1238_v16 = vadd.f32 %v1237_v11, %v2784_v43  ;;  %v1239_v18 = vpop.f32.mrb[79].mxu1 }
 0x217   : > { %1615 = vst [vmem:[%s2710_s9 + $0x358] sm:$0xff] %v1236_v5  ;;  %1629 = vst [vmem:[%s2710_s9 + $0x3c8] sm:$0xff] %v1127_v9  ;;  %v1240_v19 = vadd.f32 %v1239_v18, %v2784_v43 }
 0x218   : > { %1630 = vst [vmem:[%s2710_s9 + $0x3d0] sm:$0xff] %v1238_v16 }
 0x219   : > { %1631 = vst [vmem:[%s2710_s9 + $0x3d8] sm:$0xff] %v1240_v19  ;;  %v1130_v21 = vpop.f32.mrb[80].mxu0 }
 0x21a   : > { %v1131_v23 = vadd.f32 %v1130_v21, %v2803_v58  ;;  %v1132_v25 = vpop.f32.mrb[81].mxu0 }
 0x21b   : > { %v1133_v27 = vadd.f32 %v1132_v25, %v2803_v58  ;;  %v1243_v29 = vpop.f32.mrb[80].mxu1  ;;  %v1134_v32 = vpop.f32.mrb[82].mxu0 }
 0x21c   : > { %1644 = vst [vmem:[%s2710_s9 + $0x440] sm:$0xff] %v1131_v23  ;;  %v1244_v33 = vadd.f32 %v1243_v29, %v2803_v58  ;;  %v1135_v31 = vadd.f32 %v1134_v32, %v2810_v60  ;;  %v1245_v34 = vpop.f32.mrb[81].mxu1  ;;  %v1136_v35 = vpop.f32.mrb[83].mxu0 }
 0x21d   : > { %1645 = vst [vmem:[%s2710_s9 + $0x448] sm:$0xff] %v1133_v27  ;;  %v1246_v36 = vadd.f32 %v1245_v34, %v2803_v58  ;;  %v1137_v13 = vadd.f32 %v1136_v35, %v2810_v60  ;;  %v1247_v8 = vpop.f32.mrb[82].mxu1 }
 0x21e   : > { %1646 = vst [vmem:[%s2710_s9 + $0x450] sm:$0xff] %v1244_v33  ;;  %1660 = vst [vmem:[%s2710_s9 + $0x4c0] sm:$0xff] %v1135_v31  ;;  %v1248_v37 = vadd.f32 %v1247_v8, %v2810_v60  ;;  %v1249_v10 = vpop.f32.mrb[83].mxu1 }
 0x21f   : > { %1647 = vst [vmem:[%s2710_s9 + $0x458] sm:$0xff] %v1246_v36  ;;  %1661 = vst [vmem:[%s2710_s9 + $0x4c8] sm:$0xff] %v1137_v13  ;;  %v1250_v15 = vadd.f32 %v1249_v10, %v2810_v60 }
 0x220   : > { %1662 = vst [vmem:[%s2710_s9 + $0x4d0] sm:$0xff] %v1248_v37 }
 0x221   : > { %1663 = vst [vmem:[%s2710_s9 + $0x4d8] sm:$0xff] %v1250_v15  ;;  %v1140_v38 = vpop.f32.mrb[84].mxu0 }
 0x222   : > { %v1141_v40 = vadd.f32 %v1140_v38, %v2829_v20  ;;  %v1142_v42 = vpop.f32.mrb[85].mxu0 }
 0x223   : > { %v1143_v12 = vadd.f32 %v1142_v42, %v2829_v20  ;;  %v1253_v44 = vpop.f32.mrb[84].mxu1  ;;  %v1144_v14 = vpop.f32.mrb[86].mxu0 }
 0x224   : > { %1676 = vst [vmem:[%s2710_s9 + $0x540] sm:$0xff] %v1141_v40  ;;  %v1254_v46 = vadd.f32 %v1253_v44, %v2829_v20  ;;  %v1145_v48 = vadd.f32 %v1144_v14, %v2835_v22  ;;  %v1255_v49 = vpop.f32.mrb[85].mxu1  ;;  %v1146_v24 = vpop.f32.mrb[87].mxu0 }
 0x225   : > { %1677 = vst [vmem:[%s2710_s9 + $0x548] sm:$0xff] %v1143_v12  ;;  %v1256_v50 = vadd.f32 %v1255_v49, %v2829_v20  ;;  %v1147_v51 = vadd.f32 %v1146_v24, %v2835_v22  ;;  %v1257_v52 = vpop.f32.mrb[86].mxu1 }
 0x226   : > { %1678 = vst [vmem:[%s2710_s9 + $0x550] sm:$0xff] %v1254_v46  ;;  %1692 = vst [vmem:[%s2710_s9 + $0x5c0] sm:$0xff] %v1145_v48  ;;  %v1258_v53 = vadd.f32 %v1257_v52, %v2835_v22  ;;  %v1259_v54 = vpop.f32.mrb[87].mxu1 }
 0x227   : > { %1679 = vst [vmem:[%s2710_s9 + $0x558] sm:$0xff] %v1256_v50  ;;  %1693 = vst [vmem:[%s2710_s9 + $0x5c8] sm:$0xff] %v1147_v51  ;;  %v1260_v55 = vadd.f32 %v1259_v54, %v2835_v22 }
 0x228   : > { %1694 = vst [vmem:[%s2710_s9 + $0x5d0] sm:$0xff] %v1258_v53 }
 0x229   : > { %1695 = vst [vmem:[%s2710_s9 + $0x5d8] sm:$0xff] %v1260_v55  ;;  %v1150_v57 = vpop.f32.mrb[88].mxu0 }
 0x22a   : > { %v1151_v61 = vadd.f32 %v1150_v57, %v2851_v17  ;;  %v1152_v62 = vpop.f32.mrb[89].mxu0 }
 0x22b   : > { %v1153_v0 = vadd.f32 %v1152_v62, %v2851_v17  ;;  %v1263_v2 = vpop.f32.mrb[88].mxu1  ;;  %v1154_v3 = vpop.f32.mrb[90].mxu0 }
 0x22c   : > { %1708 = vst [vmem:[%s2710_s9 + $0x640] sm:$0xff] %v1151_v61  ;;  %v1264_v4 = vadd.f32 %v1263_v2, %v2851_v17  ;;  %v1155_v30 = vadd.f32 %v1154_v3, %v2855_v39  ;;  %v1265_v6 = vpop.f32.mrb[89].mxu1  ;;  %v1156_v7 = vpop.f32.mrb[91].mxu0 }
 0x22d   : > { %1709 = vst [vmem:[%s2710_s9 + $0x648] sm:$0xff] %v1153_v0  ;;  %v1266_v5 = vadd.f32 %v1265_v6, %v2851_v17  ;;  %v1157_v9 = vadd.f32 %v1156_v7, %v2855_v39  ;;  %v1267_v11 = vpop.f32.mrb[90].mxu1 }
 0x22e   : > { %1710 = vst [vmem:[%s2710_s9 + $0x650] sm:$0xff] %v1264_v4  ;;  %1724 = vst [vmem:[%s2710_s9 + $0x6c0] sm:$0xff] %v1155_v30  ;;  %v1268_v16 = vadd.f32 %v1267_v11, %v2855_v39  ;;  %v1269_v18 = vpop.f32.mrb[91].mxu1 }
 0x22f   : > { %1711 = vst [vmem:[%s2710_s9 + $0x658] sm:$0xff] %v1266_v5  ;;  %1725 = vst [vmem:[%s2710_s9 + $0x6c8] sm:$0xff] %v1157_v9  ;;  %v1270_v19 = vadd.f32 %v1269_v18, %v2855_v39 }
 0x230   : > { %1726 = vst [vmem:[%s2710_s9 + $0x6d0] sm:$0xff] %v1268_v16 }
 0x231   : > { %1727 = vst [vmem:[%s2710_s9 + $0x6d8] sm:$0xff] %v1270_v19  ;;  %v1160_v21 = vpop.f32.mrb[92].mxu0 }
 0x232   : > { %v1161_v23 = vadd.f32 %v1160_v21, %v2871_v56  ;;  %v1162_v25 = vpop.f32.mrb[93].mxu0 }
 0x233   : > { %v1163_v27 = vadd.f32 %v1162_v25, %v2871_v56  ;;  %v1273_v29 = vpop.f32.mrb[92].mxu1  ;;  %v1164_v32 = vpop.f32.mrb[94].mxu0 }
 0x234   : > { %1740 = vst [vmem:[%s2710_s9 + $0x740] sm:$0xff] %v1161_v23  ;;  %v1274_v33 = vadd.f32 %v1273_v29, %v2871_v56  ;;  %v1165_v31 = vadd.f32 %v1164_v32, %v2875_v59  ;;  %v1275_v34 = vpop.f32.mrb[93].mxu1  ;;  %v1166_v35 = vpop.f32.mrb[95].mxu0 }
 0x235   : > { %1741 = vst [vmem:[%s2710_s9 + $0x748] sm:$0xff] %v1163_v27  ;;  %v1276_v36 = vadd.f32 %v1275_v34, %v2871_v56  ;;  %v1167_v13 = vadd.f32 %v1166_v35, %v2875_v59  ;;  %v1277_v8 = vpop.f32.mrb[94].mxu1 }
 0x236   : > { %1742 = vst [vmem:[%s2710_s9 + $0x750] sm:$0xff] %v1274_v33  ;;  %1756 = vst [vmem:[%s2710_s9 + $0x7c0] sm:$0xff] %v1165_v31  ;;  %v1278_v37 = vadd.f32 %v1277_v8, %v2875_v59  ;;  %v1279_v10 = vpop.f32.mrb[95].mxu1 }
 0x237   : > { %1743 = vst [vmem:[%s2710_s9 + $0x758] sm:$0xff] %v1276_v36  ;;  %1757 = vst [vmem:[%s2710_s9 + $0x7c8] sm:$0xff] %v1167_v13  ;;  %v1280_v15 = vadd.f32 %v1279_v10, %v2875_v59 }
 0x238   : > { %1758 = vst [vmem:[%s2710_s9 + $0x7d0] sm:$0xff] %v1278_v37 }
 0x239   : > { %1759 = vst [vmem:[%s2710_s9 + $0x7d8] sm:$0xff] %v1280_v15  ;;  %v1316_v38 = vpop.f32.mrb[96].mxu0 }
 0x23a   : > { %v1317_v40 = vadd.f32 %v1316_v38, %v2699_v45  ;;  %v1318_v42 = vpop.f32.mrb[97].mxu0 }
 0x23b   : > { %v1319_v12 = vadd.f32 %v1318_v42, %v2699_v45  ;;  %v1429_v44 = vpop.f32.mrb[96].mxu1  ;;  %v1320_v14 = vpop.f32.mrb[98].mxu0 }
 0x23c   : > { %1520 = vst [vmem:[%s2710_s9 + $0x60] sm:$0xff] %v1317_v40  ;;  %v1430_v46 = vadd.f32 %v1429_v44, %v2699_v45  ;;  %v1321_v48 = vadd.f32 %v1320_v14, %v2704_v47  ;;  %v1431_v49 = vpop.f32.mrb[97].mxu1  ;;  %v1322_v24 = vpop.f32.mrb[99].mxu0 }
 0x23d   : > { %1521 = vst [vmem:[%s2710_s9 + $0x68] sm:$0xff] %v1319_v12  ;;  %v1432_v50 = vadd.f32 %v1431_v49, %v2699_v45  ;;  %v1323_v51 = vadd.f32 %v1322_v24, %v2704_v47  ;;  %v1433_v52 = vpop.f32.mrb[98].mxu1 }
 0x23e   : > { %1522 = vst [vmem:[%s2710_s9 + $0x70] sm:$0xff] %v1430_v46  ;;  %1536 = vst [vmem:[%s2710_s9 + $0xe0] sm:$0xff] %v1321_v48  ;;  %v1434_v53 = vadd.f32 %v1433_v52, %v2704_v47  ;;  %v1435_v54 = vpop.f32.mrb[99].mxu1 }
 0x23f   : > { %1523 = vst [vmem:[%s2710_s9 + $0x78] sm:$0xff] %v1432_v50  ;;  %1537 = vst [vmem:[%s2710_s9 + $0xe8] sm:$0xff] %v1323_v51  ;;  %v1436_v55 = vadd.f32 %v1435_v54, %v2704_v47 }
 0x240   : > { %1538 = vst [vmem:[%s2710_s9 + $0xf0] sm:$0xff] %v1434_v53 }
 0x241   : > { %1539 = vst [vmem:[%s2710_s9 + $0xf8] sm:$0xff] %v1436_v55  ;;  %v1326_v57 = vpop.f32.mrb[100].mxu0 }
 0x242   : > { %v1327_v45 = vadd.f32 %v1326_v57, %v2725_v63  ;;  %v1328_v61 = vpop.f32.mrb[101].mxu0 }
 0x243   : > { %v1329_v62 = vadd.f32 %v1328_v61, %v2725_v63  ;;  %v1439_v0 = vpop.f32.mrb[100].mxu1  ;;  %v1330_v2 = vpop.f32.mrb[102].mxu0 }
 0x244   : > { %1552 = vst [vmem:[%s2710_s9 + $0x160] sm:$0xff] %v1327_v45  ;;  %v1440_v3 = vadd.f32 %v1439_v0, %v2725_v63  ;;  %v1331_v47 = vadd.f32 %v1330_v2, %v2732_v1  ;;  %v1441_v4 = vpop.f32.mrb[101].mxu1  ;;  %v1332_v30 = vpop.f32.mrb[103].mxu0 }
 0x245   : > { %1553 = vst [vmem:[%s2710_s9 + $0x168] sm:$0xff] %v1329_v62  ;;  %v1442_v6 = vadd.f32 %v1441_v4, %v2725_v63  ;;  %v1333_v7 = vadd.f32 %v1332_v30, %v2732_v1  ;;  %v1443_v5 = vpop.f32.mrb[102].mxu1 }
 0x246   : > { %1554 = vst [vmem:[%s2710_s9 + $0x170] sm:$0xff] %v1440_v3  ;;  %1568 = vst [vmem:[%s2710_s9 + $0x1e0] sm:$0xff] %v1331_v47  ;;  %v1444_v9 = vadd.f32 %v1443_v5, %v2732_v1  ;;  %v1445_v11 = vpop.f32.mrb[103].mxu1 }
 0x247   : > { %1555 = vst [vmem:[%s2710_s9 + $0x178] sm:$0xff] %v1442_v6  ;;  %1569 = vst [vmem:[%s2710_s9 + $0x1e8] sm:$0xff] %v1333_v7  ;;  %v1446_v16 = vadd.f32 %v1445_v11, %v2732_v1 }
 0x248   : > { %1570 = vst [vmem:[%s2710_s9 + $0x1f0] sm:$0xff] %v1444_v9 }
 0x249   : > { %1571 = vst [vmem:[%s2710_s9 + $0x1f8] sm:$0xff] %v1446_v16  ;;  %v1336_v18 = vpop.f32.mrb[104].mxu0 }
 0x24a   : > { %v1337_v63 = vadd.f32 %v1336_v18, %v2751_v26  ;;  %v1338_v19 = vpop.f32.mrb[105].mxu0 }
 0x24b   : > { %v1339_v21 = vadd.f32 %v1338_v19, %v2751_v26  ;;  %v1449_v23 = vpop.f32.mrb[104].mxu1  ;;  %v1340_v25 = vpop.f32.mrb[106].mxu0 }
 0x24c   : > { %1584 = vst [vmem:[%s2710_s9 + $0x260] sm:$0xff] %v1337_v63  ;;  %v1450_v27 = vadd.f32 %v1449_v23, %v2751_v26  ;;  %v1341_v1 = vadd.f32 %v1340_v25, %v2758_v28  ;;  %v1451_v29 = vpop.f32.mrb[105].mxu1  ;;  %v1342_v32 = vpop.f32.mrb[107].mxu0 }
 0x24d   : > { %1585 = vst [vmem:[%s2710_s9 + $0x268] sm:$0xff] %v1339_v21  ;;  %v1452_v33 = vadd.f32 %v1451_v29, %v2751_v26  ;;  %v1343_v31 = vadd.f32 %v1342_v32, %v2758_v28  ;;  %v1453_v34 = vpop.f32.mrb[106].mxu1 }
 0x24e   : > { %1586 = vst [vmem:[%s2710_s9 + $0x270] sm:$0xff] %v1450_v27  ;;  %1600 = vst [vmem:[%s2710_s9 + $0x2e0] sm:$0xff] %v1341_v1  ;;  %v1454_v35 = vadd.f32 %v1453_v34, %v2758_v28  ;;  %v1455_v36 = vpop.f32.mrb[107].mxu1 }
 0x24f   : > { %1587 = vst [vmem:[%s2710_s9 + $0x278] sm:$0xff] %v1452_v33  ;;  %1601 = vst [vmem:[%s2710_s9 + $0x2e8] sm:$0xff] %v1343_v31  ;;  %v1456_v13 = vadd.f32 %v1455_v36, %v2758_v28 }
 0x250   : > { %1602 = vst [vmem:[%s2710_s9 + $0x2f0] sm:$0xff] %v1454_v35 }
 0x251   : > { %1603 = vst [vmem:[%s2710_s9 + $0x2f8] sm:$0xff] %v1456_v13  ;;  %v1346_v8 = vpop.f32.mrb[108].mxu0 }
 0x252   : > { %v1347_v26 = vadd.f32 %v1346_v8, %v2777_v41  ;;  %v1348_v37 = vpop.f32.mrb[109].mxu0 }
 0x253   : > { %v1349_v10 = vadd.f32 %v1348_v37, %v2777_v41  ;;  %v1459_v15 = vpop.f32.mrb[108].mxu1  ;;  %v1350_v38 = vpop.f32.mrb[110].mxu0 }
 0x254   : > { %1616 = vst [vmem:[%s2710_s9 + $0x360] sm:$0xff] %v1347_v26  ;;  %v1460_v40 = vadd.f32 %v1459_v15, %v2777_v41  ;;  %v1351_v28 = vadd.f32 %v1350_v38, %v2784_v43  ;;  %v1461_v42 = vpop.f32.mrb[109].mxu1  ;;  %v1352_v12 = vpop.f32.mrb[111].mxu0 }
 0x255   : > { %1617 = vst [vmem:[%s2710_s9 + $0x368] sm:$0xff] %v1349_v10  ;;  %v1462_v44 = vadd.f32 %v1461_v42, %v2777_v41  ;;  %v1353_v14 = vadd.f32 %v1352_v12, %v2784_v43  ;;  %v1463_v46 = vpop.f32.mrb[110].mxu1 }
 0x256   : > { %1618 = vst [vmem:[%s2710_s9 + $0x370] sm:$0xff] %v1460_v40  ;;  %1632 = vst [vmem:[%s2710_s9 + $0x3e0] sm:$0xff] %v1351_v28  ;;  %v1464_v48 = vadd.f32 %v1463_v46, %v2784_v43  ;;  %v1465_v49 = vpop.f32.mrb[111].mxu1 }
 0x257   : > { %1619 = vst [vmem:[%s2710_s9 + $0x378] sm:$0xff] %v1462_v44  ;;  %1633 = vst [vmem:[%s2710_s9 + $0x3e8] sm:$0xff] %v1353_v14  ;;  %v1466_v24 = vadd.f32 %v1465_v49, %v2784_v43 }
 0x258   : > { %1634 = vst [vmem:[%s2710_s9 + $0x3f0] sm:$0xff] %v1464_v48 }
 0x259   : > { %1635 = vst [vmem:[%s2710_s9 + $0x3f8] sm:$0xff] %v1466_v24  ;;  %v1356_v50 = vpop.f32.mrb[112].mxu0 }
 0x25a   : > { %v1357_v41 = vadd.f32 %v1356_v50, %v2803_v58  ;;  %v1358_v51 = vpop.f32.mrb[113].mxu0 }
 0x25b   : > { %v1359_v52 = vadd.f32 %v1358_v51, %v2803_v58  ;;  %v1469_v53 = vpop.f32.mrb[112].mxu1  ;;  %v1360_v54 = vpop.f32.mrb[114].mxu0 }
 0x25c   : > { %1648 = vst [vmem:[%s2710_s9 + $0x460] sm:$0xff] %v1357_v41  ;;  %v1470_v55 = vadd.f32 %v1469_v53, %v2803_v58  ;;  %v1361_v43 = vadd.f32 %v1360_v54, %v2810_v60  ;;  %v1471_v57 = vpop.f32.mrb[113].mxu1  ;;  %v1362_v45 = vpop.f32.mrb[115].mxu0 }
 0x25d   : > { %1649 = vst [vmem:[%s2710_s9 + $0x468] sm:$0xff] %v1359_v52  ;;  %v1472_v61 = vadd.f32 %v1471_v57, %v2803_v58  ;;  %v1363_v62 = vadd.f32 %v1362_v45, %v2810_v60  ;;  %v1473_v0 = vpop.f32.mrb[114].mxu1 }
 0x25e   : > { %1650 = vst [vmem:[%s2710_s9 + $0x470] sm:$0xff] %v1470_v55  ;;  %1664 = vst [vmem:[%s2710_s9 + $0x4e0] sm:$0xff] %v1361_v43  ;;  %v1474_v2 = vadd.f32 %v1473_v0, %v2810_v60  ;;  %v1475_v3 = vpop.f32.mrb[115].mxu1 }
 0x25f   : > { %1651 = vst [vmem:[%s2710_s9 + $0x478] sm:$0xff] %v1472_v61  ;;  %1665 = vst [vmem:[%s2710_s9 + $0x4e8] sm:$0xff] %v1363_v62  ;;  %v1476_v47 = vadd.f32 %v1475_v3, %v2810_v60 }
 0x260   : > { %1666 = vst [vmem:[%s2710_s9 + $0x4f0] sm:$0xff] %v1474_v2 }
 0x261   : > { %1667 = vst [vmem:[%s2710_s9 + $0x4f8] sm:$0xff] %v1476_v47  ;;  %v1366_v4 = vpop.f32.mrb[116].mxu0 }
 0x262   : > { %v1367_v58 = vadd.f32 %v1366_v4, %v2829_v20  ;;  %v1368_v30 = vpop.f32.mrb[117].mxu0 }
 0x263   : > { %v1369_v6 = vadd.f32 %v1368_v30, %v2829_v20  ;;  %v1479_v7 = vpop.f32.mrb[116].mxu1  ;;  %v1370_v5 = vpop.f32.mrb[118].mxu0 }
 0x264   : > { %1680 = vst [vmem:[%s2710_s9 + $0x560] sm:$0xff] %v1367_v58  ;;  %v1480_v9 = vadd.f32 %v1479_v7, %v2829_v20  ;;  %v1371_v60 = vadd.f32 %v1370_v5, %v2835_v22  ;;  %v1481_v11 = vpop.f32.mrb[117].mxu1  ;;  %v1372_v16 = vpop.f32.mrb[119].mxu0 }
 0x265   : > { %1681 = vst [vmem:[%s2710_s9 + $0x568] sm:$0xff] %v1369_v6  ;;  %v1482_v18 = vadd.f32 %v1481_v11, %v2829_v20  ;;  %v1373_v63 = vadd.f32 %v1372_v16, %v2835_v22  ;;  %v1483_v19 = vpop.f32.mrb[118].mxu1 }
 0x266   : > { %1682 = vst [vmem:[%s2710_s9 + $0x570] sm:$0xff] %v1480_v9  ;;  %1696 = vst [vmem:[%s2710_s9 + $0x5e0] sm:$0xff] %v1371_v60  ;;  %v1484_v21 = vadd.f32 %v1483_v19, %v2835_v22  ;;  %v1485_v23 = vpop.f32.mrb[119].mxu1 }
 0x267   : > { %1683 = vst [vmem:[%s2710_s9 + $0x578] sm:$0xff] %v1482_v18  ;;  %1697 = vst [vmem:[%s2710_s9 + $0x5e8] sm:$0xff] %v1373_v63  ;;  %v1486_v25 = vadd.f32 %v1485_v23, %v2835_v22 }
 0x268   : > { %1698 = vst [vmem:[%s2710_s9 + $0x5f0] sm:$0xff] %v1484_v21 }
 0x269   : > { %1699 = vst [vmem:[%s2710_s9 + $0x5f8] sm:$0xff] %v1486_v25  ;;  %v1376_v27 = vpop.f32.mrb[120].mxu0 }
 0x26a   : > { %v1377_v20 = vadd.f32 %v1376_v27, %v2851_v17  ;;  %v1378_v1 = vpop.f32.mrb[121].mxu0 }
 0x26b   : > { %v1379_v29 = vadd.f32 %v1378_v1, %v2851_v17  ;;  %v1489_v32 = vpop.f32.mrb[120].mxu1  ;;  %v1380_v33 = vpop.f32.mrb[122].mxu0 }
 0x26c   : > { %1712 = vst [vmem:[%s2710_s9 + $0x660] sm:$0xff] %v1377_v20  ;;  %v1490_v31 = vadd.f32 %v1489_v32, %v2851_v17  ;;  %v1381_v22 = vadd.f32 %v1380_v33, %v2855_v39  ;;  %v1491_v34 = vpop.f32.mrb[121].mxu1  ;;  %v1382_v35 = vpop.f32.mrb[123].mxu0 }
 0x26d   : > { %1713 = vst [vmem:[%s2710_s9 + $0x668] sm:$0xff] %v1379_v29  ;;  %v1492_v36 = vadd.f32 %v1491_v34, %v2851_v17  ;;  %v1383_v13 = vadd.f32 %v1382_v35, %v2855_v39  ;;  %v1493_v8 = vpop.f32.mrb[122].mxu1 }
 0x26e   : > { %1714 = vst [vmem:[%s2710_s9 + $0x670] sm:$0xff] %v1490_v31  ;;  %1728 = vst [vmem:[%s2710_s9 + $0x6e0] sm:$0xff] %v1381_v22  ;;  %v1494_v26 = vadd.f32 %v1493_v8, %v2855_v39  ;;  %v1495_v37 = vpop.f32.mrb[123].mxu1 }
 0x26f   : > { %1715 = vst [vmem:[%s2710_s9 + $0x678] sm:$0xff] %v1492_v36  ;;  %1729 = vst [vmem:[%s2710_s9 + $0x6e8] sm:$0xff] %v1383_v13  ;;  %v1496_v10 = vadd.f32 %v1495_v37, %v2855_v39 }
 0x270   : > { %1730 = vst [vmem:[%s2710_s9 + $0x6f0] sm:$0xff] %v1494_v26 }
 0x271   : > { %1731 = vst [vmem:[%s2710_s9 + $0x6f8] sm:$0xff] %v1496_v10  ;;  %v1386_v15 = vpop.f32.mrb[124].mxu0 }
 0x272   : > { %v1387_v17 = vadd.f32 %v1386_v15, %v2871_v56  ;;  %v1388_v38 = vpop.f32.mrb[125].mxu0 }
 0x273   : > { %v1389_v40 = vadd.f32 %v1388_v38, %v2871_v56  ;;  %v1499_v28 = vpop.f32.mrb[124].mxu1  ;;  %v1390_v42 = vpop.f32.mrb[126].mxu0 }
 0x274   : > { %1744 = vst [vmem:[%s2710_s9 + $0x760] sm:$0xff] %v1387_v17  ;;  %v1500_v39 = vadd.f32 %v1499_v28, %v2871_v56  ;;  %v1391_v12 = vadd.f32 %v1390_v42, %v2875_v59  ;;  %v1501_v44 = vpop.f32.mrb[125].mxu1  ;;  %v1392_v14 = vpop.f32.mrb[127].mxu0 }
 0x275   : > { %1745 = vst [vmem:[%s2710_s9 + $0x768] sm:$0xff] %v1389_v40  ;;  %v1502_v46 = vadd.f32 %v1501_v44, %v2871_v56  ;;  %v1393_v48 = vadd.f32 %v1392_v14, %v2875_v59  ;;  %v1503_v49 = vpop.f32.mrb[126].mxu1 }
 0x276   : > { %1746 = vst [vmem:[%s2710_s9 + $0x770] sm:$0xff] %v1500_v39  ;;  %1760 = vst [vmem:[%s2710_s9 + $0x7e0] sm:$0xff] %v1391_v12  ;;  %v1504_v24 = vadd.f32 %v1503_v49, %v2875_v59  ;;  %v1505_v50 = vpop.f32.mrb[127].mxu1 }
 0x277   : > { %1747 = vst [vmem:[%s2710_s9 + $0x778] sm:$0xff] %v1502_v46  ;;  %1761 = vst [vmem:[%s2710_s9 + $0x7e8] sm:$0xff] %v1393_v48  ;;  %v1506_v56 = vadd.f32 %v1505_v50, %v2875_v59 }
 0x278   : > { %1762 = vst [vmem:[%s2710_s9 + $0x7f0] sm:$0xff] %v1504_v24 }
 0x279   : > { %1763 = vst [vmem:[%s2710_s9 + $0x7f8] sm:$0xff] %v1506_v56 }
 0x27a   : > { %2088 = shalt.err (!%p2085_p6)
}
 0x27b   : > { %s2089_s7 = scalar_lea.hbm %s3275_s27, 32768  ;;  %s2093_s10 = scalar_lea.hbm %s3344_s3, 131072 }
 0x27c   : > { %p2090_p7 = scmp.ne.s32.totalorder %s3275_s27, %s2089_s7  ;;  %p2094_p11 = scmp.lt.u32.totalorder %s3275_s27, %s3344_s3 }
 0x27d   : > { %p2095_p12 = scmp.lt.u32.totalorder %s2093_s10, %s2089_s7  ;;  %p2097_p0 = scmp.lt.u32.totalorder %s2089_s7, %s3275_s27 }
 0x27e   : > { %p2091_p9 = pnand %p2090_p7, %p2249_p3 }
 0x27f   : > { %p2096_p13 = por %p2095_p12, %p2094_p11 }
 0x280   : > { %p2092_p10 = pneg %p2091_p9 }
 0x281   : > { %p2098_p1 = por %p2097_p0, %p2096_p13 }
 0x283   : > { %p2099_p2 = pnand %p2098_p1, %p2092_p10 }
 0x285   : > { %2102 = shalt.err (!%p2099_p2)
}
 0x286   : > { %s2175_s15 = smov 2048   ;;  %s2176_s21 = smov 4096  }
 0x287   : > { %s2177_s24 = smov 128  }
 0x288   : > { %1963 = dma.vmem_to_hbm [thread:$0]  (%p2249_p3), %s3280_s16, 32768, %s3275_s27, %s3289_s28, %s2175_s15, %s2176_s21, %s2177_s24  }
 0x289 PF: > { %p1969_p4 = scmp.ge.s32.totalorder %s2169_s19, 2  ;;  %s1795_s29 = sand.u32 1, %s2141_s12  }
 0x28a   : > { %s1796_s4 = scalar_lea.sflag [#allocation3], %s1795_s29 }
 0x28b   : > { %p1966_p5 = pnand %p1969_p4, %p2258_p8 }
 0x28d   : > { %2136 = dma.done.wait (!%p1966_p5), %s1796_s4, 32768  }
 0x28e   : > { %2138 = vsyncadd (!%p1966_p5), %s1796_s4, 4294934528  ;;  %s16_s19 = sadd.s32 1, %s2169_s19   ;;  %s3347_s12 = smov %s2145_s13 }
 0x28f   : > { %p13_p6 = scmp.ge.s32.totalorder %s16_s19, 6   ;;  %s3348_s13 = smov %s2149_s14 }
 0x290   : > { %s3349_s14 = smov %s2267_s30  ;;  %s3350_s15 = smov %s2161_s17 }
 0x291   : > { %s3351_s16 = smov %s2165_s18  ;;  %s3352_s17 = smov %s3355_s22 }
 0x292   : > { %s3353_s18 = smov %s3359_s23  ;;  %15 = sbr.rel (!%p13_p6) target bundleno = 5 (0x5), region = 68 }
 0x299   :  { %1801 = vsyncpa [#allocation3], 1 }
 0x29a   :  { %1803 = vsyncpa [#allocation3 + $0x1], 1 }

</bundles_post_ra>
